<compile_context>
chip_gen: v7x
topology: tpu7x:2x2x1
jax: 0.10.0
libtpu: 0.0.40
codegen_flags: <defaults>
</compile_context>

<pallas_src>
import functools
import math

import jax
import jax.numpy as jnp
import numpy as np
from jax.experimental import pallas as pl
from jax.experimental.pallas import tpu as pltpu

_NUM_TASKS = 3  # the module exposes y_task1..y_task3 (first 3 slots per expert)


def _round_up(v, m):
    return (v + m - 1) // m * m


def _soft_moe_met_kernel(
    x_ref,       # (M, Dp)      one batch element (batch dim squeezed)
    phi_ref,     # (Dp, NPp)    scale * normalize(phi), zero padded
    psel_ref,    # (Dp, NK)     task-slot columns of phin (col j = expert j//K, slot j%K)
    temb_ref,    # (N*K, Dp)    task embeddings pre-tiled: row n*K+k = temb[k] (f32)
    wt_ref,      # (N, Dp, Dp)  expert Linear weights pre-transposed: y = x @ wt + b
    b_ref,       # (N, Dp)      expert Linear biases (f32)
    sp_ref,      # (NPp, P)     sp[e, p] = 1 iff e < N*P and e % P == p
    maskk_ref,   # (K, NK)      maskk[k, j] = 1 iff j % K == k
    y1_ref, y2_ref, y3_ref,     # (M, Dp)
    loss_ref,    # (1, 128)     per-batch MI loss term (broadcast over lanes)
    ys_ref,      # (N*K, Dp)    f32 scratch: expert outputs for the 3 task slots
    *,
    num_experts: int,
    num_real_slots: int,
    num_tasks: int,
):
    f32 = jnp.float32
    N, K = num_experts, num_tasks
    mm_dt = x_ref.dtype  # matmul operand dtype (bf16 inputs feed the MXU as bf16)

    # F.normalize(x, dim=2)  (L2, eps=1e-12).  Elementwise / softmax math stays
    # f32 (v5e has no bf16 VPU/EUP).
    x = x_ref[...].astype(f32)
    xn = x / jnp.maximum(jnp.sqrt(jnp.sum(x * x, axis=1, keepdims=True)), 1e-12)
    xn_mm = xn.astype(mm_dt)

    logits = jnp.dot(xn_mm, phi_ref[...], preferred_element_type=f32)  # (M, NPp)
    M, NPp = logits.shape

    if NPp > num_real_slots:  # mask padded (expert, slot) columns
        col = jax.lax.broadcasted_iota(jnp.int32, (M, NPp), 1)
        logits = jnp.where(col < num_real_slots, logits, -1e30)

    # c = softmax over (experts, slots); its exponentials feed the loss too.
    mc = jnp.max(logits, axis=1, keepdims=True)          # (M, 1)
    ec = jnp.exp(logits - mc)                            # (M, NPp)  (only big exp)
    rs = jnp.sum(ec, axis=1, keepdims=True)              # (M, 1)
    inv_rs = 1.0 / rs

    # ---- mutual-information loss (this batch element's term) -----------------
    # Joint softmax derived from ec/rs: sm = ec * exp(mc - mx) / total, never
    # materialized -- only the slot marginal is formed via one small matmul.
    mx = jnp.max(mc, axis=0, keepdims=True)              # (1, 1) global max
    row_scale = jnp.exp(mc - mx)                         # (M, 1)
    inv_tot = 1.0 / jnp.sum(row_scale * rs, axis=0, keepdims=True)
    p_m = row_scale * rs * inv_tot                                         # (M, 1)
    p_mt = jnp.dot(ec, sp_ref[...], preferred_element_type=f32)            # (M, P)
    p_mt = p_mt * (row_scale * inv_tot)
    p_t = jnp.sum(p_mt, axis=0, keepdims=True)                             # (1, P)
    log_term = jnp.log(p_mt / (p_m * p_t) + 1e-10)
    mi = jnp.sum(jnp.sum(p_mt * log_term, axis=1, keepdims=True),
                 axis=0, keepdims=True)                                    # (1, 1)
    loss_ref[...] = jnp.broadcast_to(-mi, loss_ref.shape)

    # ---- task-slot routing directly on the NK selected columns ---------------
    logits_sel = jnp.dot(xn_mm, psel_ref[...], preferred_element_type=f32)  # (M, NK)
    # c restricted to the task slots (reuses the full-softmax stats mc / rs).
    c_all = jnp.exp(logits_sel - mc) * inv_rs                               # (M, NK)
    # d = softmax over tokens, only needed on the task-slot columns.
    md = jnp.max(logits_sel, axis=0, keepdims=True)                         # (1, NK)
    ed = jnp.exp(logits_sel - md)
    d_all = ed / jnp.sum(ed, axis=0, keepdims=True)                         # (M, NK)

    # xs_all[n*K + k, :] = sum_m d[m, n, k] * xn[m, :]   (single MXU dot_general)
    xs_all = jax.lax.dot_general(
        d_all.astype(mm_dt), xn_mm,
        dimension_numbers=(((0,), (0,)), ((), ())),
        preferred_element_type=f32)                                         # (NK, Dp)
    xs_all = xs_all + temb_ref[...]                      # task embeddings (pre-tiled)

    # ---- experts: one (K, Dp) @ (Dp, Dp) MXU matmul per expert ---------------
    for n in range(N):
        xs_n = xs_all[n * K:(n + 1) * K, :].astype(mm_dt)                   # (K, Dp)
        ys_n = jnp.dot(xs_n, wt_ref[n], preferred_element_type=f32)
        ys_ref[n * K:(n + 1) * K, :] = ys_n + b_ref[n:n + 1, :]

    ys_all = ys_ref[...].astype(mm_dt)                                      # (NK, Dp)

    # ---- per-task combine: one (M, NK) @ (NK, Dp) MXU matmul per output ------
    maskk = maskk_ref[...]                                                  # (K, NK)
    for k, o_ref in enumerate((y1_ref, y2_ref, y3_ref)):
        ck = (c_all * maskk[k:k + 1, :]).astype(mm_dt)                      # (M, NK)
        yk = jnp.dot(ck, ys_all, preferred_element_type=f32)                # (M, Dp)
        o_ref[...] = yk.astype(o_ref.dtype)


def soft_moe_met_forward(x, params, *, num_experts, slots_per_expert):
    B, M, D = x.shape
    N, P, K = num_experts, slots_per_expert, _NUM_TASKS
    assert P >= K, "SoftMoELayerWrapperMET uses the first 3 slots as task slots"
    NP, NK = N * P, N * K
    dt = x.dtype                 # matmul/storage dtype follows the input (bf16 ok)
    f32 = jnp.float32

    Dp = _round_up(D, 128)       # lane-align features
    NPp = _round_up(NP, 128)     # lane-align the flattened (expert, slot) axis

    # ----- batch-invariant parameter prep (plain JAX, once per call) -----
    # scale * F.normalize(phi, dim=0) is hoisted out of the kernel: doing it
    # inside would repeat the same work B times (once per grid step).
    phi = params["phi"].reshape(D, NP).astype(f32)
    phin = phi / jnp.maximum(jnp.sqrt(jnp.sum(phi * phi, axis=0, keepdims=True)), 1e-12)
    phin = phin * params["scale"].reshape(()).astype(f32)
    cols = (np.arange(NK) // K) * P + (np.arange(NK) % K)   # task-slot columns
    phi_sel = phin[:, cols]                                  # (D, NK)
    phin_p = jnp.pad(phin, ((0, Dp - D), (0, NPp - NP))).astype(dt)
    psel_p = jnp.pad(phi_sel, ((0, Dp - D), (0, 0))).astype(dt)

    x_p = jnp.pad(x, ((0, 0), (0, 0), (0, Dp - D)))
    temb_p = jnp.pad(params["task_embeddings"][:K], ((0, 0), (0, Dp - D)))
    temb_tiled = jnp.tile(temb_p, (N, 1)).astype(f32)                 # (N*K, Dp)
    wt = jnp.transpose(params["expert_w"], (0, 2, 1))                 # y = x @ wt + b
    wt_p = jnp.pad(wt, ((0, 0), (0, Dp - D), (0, Dp - D))).astype(dt)
    b_p = jnp.pad(params["expert_b"], ((0, 0), (0, Dp - D))).astype(f32)

    # ----- small 0/1 constants (host-built) -----
    e = np.arange(NPp)
    sp = ((e[:, None] % P == np.arange(P)[None, :]) &
          (e[:, None] < NP)).astype(np.float32)                       # (NPp, P)
    j = np.arange(NK)
    maskk = (j[None, :] % K == np.arange(K)[:, None]).astype(np.float32)  # (K, NK)
    sp, maskk = jnp.asarray(sp), jnp.asarray(maskk)

    kernel = functools.partial(_soft_moe_met_kernel, num_experts=N,
                               num_real_slots=NP, num_tasks=K)

    out_shape = (
        jax.ShapeDtypeStruct((B, M, Dp), dt),
        jax.ShapeDtypeStruct((B, M, Dp), dt),
        jax.ShapeDtypeStruct((B, M, Dp), dt),
        jax.ShapeDtypeStruct((B, 1, 128), f32),      # per-batch loss (lane-dense)
    )
    in_specs = [
        pl.BlockSpec((None, M, Dp), lambda b: (b, 0, 0)),            # x
        pl.BlockSpec((Dp, NPp), lambda b: (0, 0)),                   # phin
        pl.BlockSpec((Dp, NK), lambda b: (0, 0)),                    # phin task cols
        pl.BlockSpec((NK, Dp), lambda b: (0, 0)),                    # task emb (tiled)
        pl.BlockSpec((N, Dp, Dp), lambda b: (0, 0, 0)),              # expert weights
        pl.BlockSpec((N, Dp), lambda b: (0, 0)),                     # expert biases
        pl.BlockSpec((NPp, P), lambda b: (0, 0)),                    # sp
        pl.BlockSpec((K, NK), lambda b: (0, 0)),                     # maskk
    ]
    out_specs = (
        pl.BlockSpec((None, M, Dp), lambda b: (b, 0, 0)),
        pl.BlockSpec((None, M, Dp), lambda b: (b, 0, 0)),
        pl.BlockSpec((None, M, Dp), lambda b: (b, 0, 0)),
        pl.BlockSpec((None, 1, 128), lambda b: (b, 0, 0)),           # per-batch loss
    )

    # VMEM budget: 2x (double-buffered) blocks + scratch + f32 intermediates +
    # headroom, clamped to every generation's physical VMEM (v7x: 64 MiB/core).
    def blk_bytes(shape, dtype):
        s = list(shape)
        s[-1] = _round_up(s[-1], 128)
        if len(s) >= 2:
            s[-2] = _round_up(s[-2], 8)
        return int(np.prod(s)) * jnp.dtype(dtype).itemsize

    blocks = [((M, Dp), dt), ((Dp, NPp), dt), ((Dp, NK), dt), ((NK, Dp), f32),
              ((N, Dp, Dp), dt), ((N, Dp), f32), ((NPp, P), f32), ((K, NK), f32),
              ((M, Dp), dt), ((M, Dp), dt), ((M, Dp), dt), ((1, 128), f32)]
    est = (2 * sum(blk_bytes(s, d) for s, d in blocks)
           + blk_bytes((NK, Dp), f32)               # ys scratch
           + 4 * blk_bytes((M, NPp), f32))          # logits/ec style intermediates
    vmem_limit = int(min(max(est + (8 << 20), 32 << 20), 64 << 20))

    y1, y2, y3, loss_b = pl.pallas_call(
        kernel,
        out_shape=out_shape,
        grid=(B,),
        in_specs=in_specs,
        out_specs=out_specs,
        scratch_shapes=[pltpu.VMEM((NK, Dp), jnp.float32)],
        compiler_params=pltpu.CompilerParams(
            dimension_semantics=("parallel",),       # batch is independent per step
            vmem_limit_bytes=vmem_limit),
    )(x_p, phin_p, psel_p, temb_tiled, wt_p, b_p, sp, maskk)

    tc_loss = jnp.sum(loss_b[:, 0, 0])
    return y1[:, :, :D], y2[:, :, :D], y3[:, :, :D], tc_loss


def init_params(key, dim, num_experts, slots_per_expert):
    kphi, kemb, kw, kb = jax.random.split(key, 4)
    phi = jax.random.normal(kphi, (dim, num_experts, slots_per_expert),
                            jnp.float32) * (1.0 / math.sqrt(dim))
    scale = jnp.ones((1,), jnp.float32)
    # The module initializes the task embeddings to zeros; use small non-zero
    # values so the addition path is actually exercised.
    task_embeddings = 0.02 * jax.random.normal(kemb, (7, dim), jnp.float32)
    bound = 1.0 / math.sqrt(dim)                       # nn.Linear default init
    expert_w = jax.random.uniform(kw, (num_experts, dim, dim), jnp.float32,
                                  minval=-bound, maxval=bound)
    expert_b = jax.random.uniform(kb, (num_experts, dim), jnp.float32,
                                  minval=-bound, maxval=bound)
    return dict(phi=phi, scale=scale, task_embeddings=task_embeddings,
                expert_w=expert_w, expert_b=expert_b)


def reference_forward(x, params, *, num_experts, slots_per_expert):
    """Pure-JAX transcription of the PyTorch forward (for verification)."""
    N, P = num_experts, slots_per_expert
    phi, scale = params["phi"], params["scale"][0]
    temb, w, b = params["task_embeddings"], params["expert_w"], params["expert_b"]

    xn = x / jnp.maximum(jnp.linalg.norm(x, axis=2, keepdims=True), 1e-12)
    phin = scale * phi / jnp.maximum(jnp.linalg.norm(phi, axis=0, keepdims=True), 1e-12)
    logits = jnp.einsum('bmd,dnp->bmnp', xn, phin)

    B, M = x.shape[0], x.shape[1]
    sm = jax.nn.softmax(logits.reshape(B, -1), axis=1).reshape(B, M, N, P)
    p_m = sm.sum(axis=(2, 3))
    p_t = sm.sum(axis=(1, 2))
    p_mt = sm.sum(axis=2)
    denum = p_m[:, :, None] * p_t[:, None, :]
    tc_loss = -jnp.sum(p_mt * jnp.log(p_mt / denum + 1e-10))

    def softmax_dims(a, dims):
        mx = jnp.max(a, axis=dims, keepdims=True)
        e = jnp.exp(a - mx)
        return e / jnp.sum(e, axis=dims, keepdims=True)

    d_r = softmax_dims(logits, (1,))
    c_r = softmax_dims(logits, (2, 3))
    xs = jnp.einsum('bmd,bmnp->bnpd', xn, d_r)
    xs = xs.at[:, :, 0, :].add(temb[0])
    xs = xs.at[:, :, 1, :].add(temb[1])
    xs = xs.at[:, :, 2, :].add(temb[2])
    ys = jnp.einsum('bnpd,nod->bnpo', xs, w) + b[None, :, None, :]
    y = jnp.einsum('bnpd,bmnp->bmpd', ys, c_r)
    return y[:, :, 0, :], y[:, :, 1, :], y[:, :, 2, :], tc_loss


if __name__ == "__main__":
    B, M, D = 2, 8, 32          # batch, seq_len, dim
    N, P = 4, 4                 # num_experts, slots_per_expert (>= 3 task slots)

    key = jax.random.PRNGKey(0)
    kx, kp = jax.random.split(key)
    x = jax.random.normal(kx, (B, M, D), jnp.float32)
    params = init_params(kp, D, N, P)

    outs = soft_moe_met_forward(x, params, num_experts=N, slots_per_expert=P)
    y1, y2, y3, tc_loss = jax.block_until_ready(outs)

    r1, r2, r3, r_loss = reference_forward(x, params, num_experts=N, slots_per_expert=P)
    np.testing.assert_allclose(np.asarray(y1), np.asarray(r1), rtol=2e-2, atol=2e-3)
    np.testing.assert_allclose(np.asarray(y2), np.asarray(r2), rtol=2e-2, atol=2e-3)
    np.testing.assert_allclose(np.asarray(y3), np.asarray(r3), rtol=2e-2, atol=2e-3)
    np.testing.assert_allclose(np.asarray(tc_loss), np.asarray(r_loss),
                               rtol=2e-2, atol=2e-3)

    print("KERNEL_OK")
</pallas_src>

<mosaic_0001>
module attributes {stable_mosaic.version = 11 : i64} {
  func.func @_soft_moe_met_kernel(%arg0: i32, %arg1: memref<1x8x128xf32, #tpu.memory_space<vmem>>, %arg2: memref<128x128xf32, #tpu.memory_space<vmem>>, %arg3: memref<128x12xf32, #tpu.memory_space<vmem>>, %arg4: memref<12x128xf32, #tpu.memory_space<vmem>>, %arg5: memref<4x128x128xf32, #tpu.memory_space<vmem>>, %arg6: memref<4x128xf32, #tpu.memory_space<vmem>>, %arg7: memref<128x4xf32, #tpu.memory_space<vmem>>, %arg8: memref<3x12xf32, #tpu.memory_space<vmem>>, %arg9: memref<1x8x128xf32, #tpu.memory_space<vmem>>, %arg10: memref<1x8x128xf32, #tpu.memory_space<vmem>>, %arg11: memref<1x8x128xf32, #tpu.memory_space<vmem>>, %arg12: memref<1x1x128xf32, #tpu.memory_space<vmem>>, %arg13: memref<12x128xf32, #tpu.memory_space<vmem>>) attributes {dimension_semantics = [#tpu.dimension_semantics<parallel>], iteration_bounds = array<i64: 2>, scalar_prefetch = 0 : i64, scratch_operands = 1 : i64, tpu.core_type = #tpu.core_type<tc>, window_params = [{transform_indices = @transform_0, window_bounds = array<i64: 1, 8, 128>}, {pipeline_mode = #tpu.pipeline_mode<synchronous>, transform_indices = @transform_1, window_bounds = array<i64: 128, 128>}, {pipeline_mode = #tpu.pipeline_mode<synchronous>, transform_indices = @transform_2, window_bounds = array<i64: 128, 12>}, {pipeline_mode = #tpu.pipeline_mode<synchronous>, transform_indices = @transform_3, window_bounds = array<i64: 12, 128>}, {pipeline_mode = #tpu.pipeline_mode<synchronous>, transform_indices = @transform_4, window_bounds = array<i64: 4, 128, 128>}, {pipeline_mode = #tpu.pipeline_mode<synchronous>, transform_indices = @transform_5, window_bounds = array<i64: 4, 128>}, {pipeline_mode = #tpu.pipeline_mode<synchronous>, transform_indices = @transform_6, window_bounds = array<i64: 128, 4>}, {pipeline_mode = #tpu.pipeline_mode<synchronous>, transform_indices = @transform_7, window_bounds = array<i64: 3, 12>}, {transform_indices = @transform_8, window_bounds = array<i64: 1, 8, 128>}, {transform_indices = @transform_9, window_bounds = array<i64: 1, 8, 128>}, {transform_indices = @transform_10, window_bounds = array<i64: 1, 8, 128>}, {transform_indices = @transform_11, window_bounds = array<i64: 1, 1, 128>}]} {
    %c0 = arith.constant 0 : index
    %c0_0 = arith.constant 0 : index
    %c0_1 = arith.constant 0 : index
    %0 = vector.load %arg1[%c0, %c0_0, %c0_1] : memref<1x8x128xf32, #tpu.memory_space<vmem>>, vector<1x8x128xf32>
    %1 = vector.shape_cast %0 : vector<1x8x128xf32> to vector<8x128xf32>
    %2 = arith.mulf %1, %1 : vector<8x128xf32>
    %cst = arith.constant dense<0.000000e+00> : vector<8xf32>
    %3 = vector.multi_reduction <add>, %2, %cst [1] : vector<8x128xf32> to vector<8xf32>
    %4 = vector.shape_cast %3 : vector<8xf32> to vector<8x1xf32>
    %5 = math.sqrt %4 : vector<8x1xf32>
    %cst_2 = arith.constant 9.99999996E-13 : f32
    %6 = vector.broadcast %cst_2 : f32 to vector<8x1xf32>
    %7 = arith.maximumf %5, %6 : vector<8x1xf32>
    %8 = vector.broadcast %7 : vector<8x1xf32> to vector<8x128xf32>
    %9 = arith.divf %1, %8 : vector<8x128xf32>
    %c0_3 = arith.constant 0 : index
    %c0_4 = arith.constant 0 : index
    %10 = vector.load %arg2[%c0_3, %c0_4] : memref<128x128xf32, #tpu.memory_space<vmem>>, vector<128x128xf32>
    %cst_5 = arith.constant dense<0.000000e+00> : vector<8x128xf32>
    %11 = tpu.matmul %9, %10, %cst_5 {dimension_numbers = #tpu.dot_dimension_numbers<[1], [0], [0], [1], [0, 0, 1, 1], [], []>} : vector<8x128xf32>, vector<128x128xf32>, vector<8x128xf32> -> vector<8x128xf32>
    %12 = tpu.iota {dimensions = array<i32: 1>} : vector<8x128xi32>
    %c16_i32 = arith.constant 16 : i32
    %13 = vector.broadcast %c16_i32 : i32 to vector<8x128xi32>
    %14 = arith.cmpi slt, %12, %13 : vector<8x128xi32>
    %cst_6 = arith.constant -1.000000e+30 : f32
    %15 = vector.broadcast %cst_6 : f32 to vector<8x128xf32>
    %16 = arith.select %14, %11, %15 : vector<8x128xi1>, vector<8x128xf32>
    %cst_7 = arith.constant dense<0xFF800000> : vector<8xf32>
    %17 = vector.multi_reduction <maximumf>, %16, %cst_7 [1] : vector<8x128xf32> to vector<8xf32>
    %18 = vector.shape_cast %17 : vector<8xf32> to vector<8x1xf32>
    %19 = vector.broadcast %18 : vector<8x1xf32> to vector<8x128xf32>
    %20 = arith.subf %16, %19 : vector<8x128xf32>
    %21 = math.exp %20 : vector<8x128xf32>
    %cst_8 = arith.constant dense<0.000000e+00> : vector<8xf32>
    %22 = vector.multi_reduction <add>, %21, %cst_8 [1] : vector<8x128xf32> to vector<8xf32>
    %23 = vector.shape_cast %22 : vector<8xf32> to vector<8x1xf32>
    %cst_9 = arith.constant 1.000000e+00 : f32
    %24 = vector.broadcast %cst_9 : f32 to vector<8x1xf32>
    %25 = arith.divf %24, %23 : vector<8x1xf32>
    %cst_10 = arith.constant dense<0xFF800000> : vector<1xf32>
    %26 = vector.multi_reduction <maximumf>, %18, %cst_10 [0] : vector<8x1xf32> to vector<1xf32>
    %27 = vector.shape_cast %26 : vector<1xf32> to vector<1x1xf32>
    %28 = vector.broadcast %27 : vector<1x1xf32> to vector<8x1xf32>
    %29 = arith.subf %18, %28 : vector<8x1xf32>
    %30 = math.exp %29 : vector<8x1xf32>
    %31 = arith.mulf %30, %23 : vector<8x1xf32>
    %cst_11 = arith.constant dense<0.000000e+00> : vector<1xf32>
    %32 = vector.multi_reduction <add>, %31, %cst_11 [0] : vector<8x1xf32> to vector<1xf32>
    %33 = vector.shape_cast %32 : vector<1xf32> to vector<1x1xf32>
    %cst_12 = arith.constant 1.000000e+00 : f32
    %34 = vector.broadcast %cst_12 : f32 to vector<1x1xf32>
    %35 = arith.divf %34, %33 : vector<1x1xf32>
    %36 = arith.mulf %30, %23 : vector<8x1xf32>
    %37 = vector.broadcast %35 : vector<1x1xf32> to vector<8x1xf32>
    %38 = arith.mulf %36, %37 : vector<8x1xf32>
    %c0_13 = arith.constant 0 : index
    %c0_14 = arith.constant 0 : index
    %39 = vector.load %arg7[%c0_13, %c0_14] : memref<128x4xf32, #tpu.memory_space<vmem>>, vector<128x4xf32>
    %cst_15 = arith.constant dense<0.000000e+00> : vector<8x4xf32>
    %40 = tpu.matmul %21, %39, %cst_15 {dimension_numbers = #tpu.dot_dimension_numbers<[1], [0], [0], [1], [0, 0, 1, 1], [], []>} : vector<8x128xf32>, vector<128x4xf32>, vector<8x4xf32> -> vector<8x4xf32>
    %41 = vector.broadcast %35 : vector<1x1xf32> to vector<8x1xf32>
    %42 = arith.mulf %30, %41 : vector<8x1xf32>
    %43 = vector.broadcast %42 : vector<8x1xf32> to vector<8x4xf32>
    %44 = arith.mulf %40, %43 : vector<8x4xf32>
    %cst_16 = arith.constant dense<0.000000e+00> : vector<4xf32>
    %45 = vector.multi_reduction <add>, %44, %cst_16 [0] : vector<8x4xf32> to vector<4xf32>
    %46 = vector.shape_cast %45 : vector<4xf32> to vector<1x4xf32>
    %47 = vector.broadcast %38 : vector<8x1xf32> to vector<8x4xf32>
    %48 = vector.broadcast %46 : vector<1x4xf32> to vector<8x4xf32>
    %49 = arith.mulf %47, %48 : vector<8x4xf32>
    %50 = arith.divf %44, %49 : vector<8x4xf32>
    %cst_17 = arith.constant 1.000000e-10 : f32
    %51 = vector.broadcast %cst_17 : f32 to vector<8x4xf32>
    %52 = arith.addf %50, %51 : vector<8x4xf32>
    %53 = math.log %52 : vector<8x4xf32>
    %54 = arith.mulf %44, %53 : vector<8x4xf32>
    %cst_18 = arith.constant dense<0.000000e+00> : vector<8xf32>
    %55 = vector.multi_reduction <add>, %54, %cst_18 [1] : vector<8x4xf32> to vector<8xf32>
    %56 = vector.shape_cast %55 : vector<8xf32> to vector<8x1xf32>
    %cst_19 = arith.constant dense<0.000000e+00> : vector<1xf32>
    %57 = vector.multi_reduction <add>, %56, %cst_19 [0] : vector<8x1xf32> to vector<1xf32>
    %58 = vector.shape_cast %57 : vector<1xf32> to vector<1x1xf32>
    %cst_20 = arith.constant 0.000000e+00 : f32
    %59 = vector.broadcast %cst_20 : f32 to vector<1x1xf32>
    %60 = arith.subf %59, %58 : vector<1x1xf32>
    %61 = vector.shape_cast %60 : vector<1x1xf32> to vector<1x1xf32>
    %62 = vector.broadcast %61 : vector<1x1xf32> to vector<1x128xf32>
    %c0_21 = arith.constant 0 : index
    %c0_22 = arith.constant 0 : index
    %c0_23 = arith.constant 0 : index
    %63 = vector.load %arg12[%c0_21, %c0_22, %c0_23] : memref<1x1x128xf32, #tpu.memory_space<vmem>>, vector<1x1x128xf32>
    %64 = vector.shape_cast %63 : vector<1x1x128xf32> to vector<1x128xf32>
    %65 = vector.shape_cast %62 : vector<1x128xf32> to vector<1x1x128xf32>
    tpu.vector_store %arg12[%c0_21, %c0_22, %c0_23], %65 {strides = array<i32>} : memref<1x1x128xf32, #tpu.memory_space<vmem>>, vector<1x1x128xf32>,
    %c0_24 = arith.constant 0 : index
    %c0_25 = arith.constant 0 : index
    %66 = vector.load %arg3[%c0_24, %c0_25] : memref<128x12xf32, #tpu.memory_space<vmem>>, vector<128x12xf32>
    %cst_26 = arith.constant dense<0.000000e+00> : vector<8x12xf32>
    %67 = tpu.matmul %9, %66, %cst_26 {dimension_numbers = #tpu.dot_dimension_numbers<[1], [0], [0], [1], [0, 0, 1, 1], [], []>} : vector<8x128xf32>, vector<128x12xf32>, vector<8x12xf32> -> vector<8x12xf32>
    %68 = vector.broadcast %18 : vector<8x1xf32> to vector<8x12xf32>
    %69 = arith.subf %67, %68 : vector<8x12xf32>
    %70 = math.exp %69 : vector<8x12xf32>
    %71 = vector.broadcast %25 : vector<8x1xf32> to vector<8x12xf32>
    %72 = arith.mulf %70, %71 : vector<8x12xf32>
    %cst_27 = arith.constant dense<0xFF800000> : vector<12xf32>
    %73 = vector.multi_reduction <maximumf>, %67, %cst_27 [0] : vector<8x12xf32> to vector<12xf32>
    %74 = vector.shape_cast %73 : vector<12xf32> to vector<1x12xf32>
    %75 = vector.broadcast %74 : vector<1x12xf32> to vector<8x12xf32>
    %76 = arith.subf %67, %75 : vector<8x12xf32>
    %77 = math.exp %76 : vector<8x12xf32>
    %cst_28 = arith.constant dense<0.000000e+00> : vector<12xf32>
    %78 = vector.multi_reduction <add>, %77, %cst_28 [0] : vector<8x12xf32> to vector<12xf32>
    %79 = vector.shape_cast %78 : vector<12xf32> to vector<1x12xf32>
    %80 = vector.broadcast %79 : vector<1x12xf32> to vector<8x12xf32>
    %81 = arith.divf %77, %80 : vector<8x12xf32>
    %cst_29 = arith.constant dense<0.000000e+00> : vector<12x128xf32>
    %82 = tpu.matmul %81, %9, %cst_29 {dimension_numbers = #tpu.dot_dimension_numbers<[0], [0], [1], [1], [0, 1, 1, 1], [], []>} : vector<8x12xf32>, vector<8x128xf32>, vector<12x128xf32> -> vector<12x128xf32>
    %c0_30 = arith.constant 0 : index
    %c0_31 = arith.constant 0 : index
    %83 = vector.load %arg4[%c0_30, %c0_31] : memref<12x128xf32, #tpu.memory_space<vmem>>, vector<12x128xf32>
    %84 = arith.addf %82, %83 : vector<12x128xf32>
    %85 = vector.extract_strided_slice %84 {offsets = [0, 0], sizes = [3, 128], strides = [1, 1]} : vector<12x128xf32> to vector<3x128xf32>
    %c0_32 = arith.constant 0 : index
    %c0_33 = arith.constant 0 : index
    %c0_34 = arith.constant 0 : index
    %86 = vector.load %arg5[%c0_32, %c0_33, %c0_34] : memref<4x128x128xf32, #tpu.memory_space<vmem>>, vector<1x128x128xf32>
    %87 = vector.shape_cast %86 : vector<1x128x128xf32> to vector<128x128xf32>
    %cst_35 = arith.constant dense<0.000000e+00> : vector<3x128xf32>
    %88 = tpu.matmul %85, %87, %cst_35 {dimension_numbers = #tpu.dot_dimension_numbers<[1], [0], [0], [1], [0, 0, 1, 1], [], []>} : vector<3x128xf32>, vector<128x128xf32>, vector<3x128xf32> -> vector<3x128xf32>
    %c0_36 = arith.constant 0 : index
    %c0_37 = arith.constant 0 : index
    %89 = vector.load %arg6[%c0_36, %c0_37] : memref<4x128xf32, #tpu.memory_space<vmem>>, vector<1x128xf32>
    %90 = vector.broadcast %89 : vector<1x128xf32> to vector<3x128xf32>
    %91 = arith.addf %88, %90 : vector<3x128xf32>
    %c0_38 = arith.constant 0 : index
    %c0_39 = arith.constant 0 : index
    %92 = vector.load %arg13[%c0_38, %c0_39] : memref<12x128xf32, #tpu.memory_space<vmem>>, vector<3x128xf32>
    tpu.vector_store %arg13[%c0_38, %c0_39], %91 {strides = array<i32>} : memref<12x128xf32, #tpu.memory_space<vmem>>, vector<3x128xf32>,
    %93 = vector.extract_strided_slice %84 {offsets = [3, 0], sizes = [3, 128], strides = [1, 1]} : vector<12x128xf32> to vector<3x128xf32>
    %c1 = arith.constant 1 : index
    %c0_40 = arith.constant 0 : index
    %c0_41 = arith.constant 0 : index
    %94 = vector.load %arg5[%c1, %c0_40, %c0_41] : memref<4x128x128xf32, #tpu.memory_space<vmem>>, vector<1x128x128xf32>
    %95 = vector.shape_cast %94 : vector<1x128x128xf32> to vector<128x128xf32>
    %cst_42 = arith.constant dense<0.000000e+00> : vector<3x128xf32>
    %96 = tpu.matmul %93, %95, %cst_42 {dimension_numbers = #tpu.dot_dimension_numbers<[1], [0], [0], [1], [0, 0, 1, 1], [], []>} : vector<3x128xf32>, vector<128x128xf32>, vector<3x128xf32> -> vector<3x128xf32>
    %c1_43 = arith.constant 1 : index
    %c0_44 = arith.constant 0 : index
    %97 = vector.load %arg6[%c1_43, %c0_44] : memref<4x128xf32, #tpu.memory_space<vmem>>, vector<1x128xf32>
    %98 = vector.broadcast %97 : vector<1x128xf32> to vector<3x128xf32>
    %99 = arith.addf %96, %98 : vector<3x128xf32>
    %c3 = arith.constant 3 : index
    %c0_45 = arith.constant 0 : index
    %100 = vector.load %arg13[%c3, %c0_45] : memref<12x128xf32, #tpu.memory_space<vmem>>, vector<3x128xf32>
    tpu.vector_store %arg13[%c3, %c0_45], %99 {strides = array<i32>} : memref<12x128xf32, #tpu.memory_space<vmem>>, vector<3x128xf32>,
    %101 = vector.extract_strided_slice %84 {offsets = [6, 0], sizes = [3, 128], strides = [1, 1]} : vector<12x128xf32> to vector<3x128xf32>
    %c2 = arith.constant 2 : index
    %c0_46 = arith.constant 0 : index
    %c0_47 = arith.constant 0 : index
    %102 = vector.load %arg5[%c2, %c0_46, %c0_47] : memref<4x128x128xf32, #tpu.memory_space<vmem>>, vector<1x128x128xf32>
    %103 = vector.shape_cast %102 : vector<1x128x128xf32> to vector<128x128xf32>
    %cst_48 = arith.constant dense<0.000000e+00> : vector<3x128xf32>
    %104 = tpu.matmul %101, %103, %cst_48 {dimension_numbers = #tpu.dot_dimension_numbers<[1], [0], [0], [1], [0, 0, 1, 1], [], []>} : vector<3x128xf32>, vector<128x128xf32>, vector<3x128xf32> -> vector<3x128xf32>
    %c2_49 = arith.constant 2 : index
    %c0_50 = arith.constant 0 : index
    %105 = vector.load %arg6[%c2_49, %c0_50] : memref<4x128xf32, #tpu.memory_space<vmem>>, vector<1x128xf32>
    %106 = vector.broadcast %105 : vector<1x128xf32> to vector<3x128xf32>
    %107 = arith.addf %104, %106 : vector<3x128xf32>
    %c6 = arith.constant 6 : index
    %c0_51 = arith.constant 0 : index
    %108 = vector.load %arg13[%c6, %c0_51] : memref<12x128xf32, #tpu.memory_space<vmem>>, vector<3x128xf32>
    tpu.vector_store %arg13[%c6, %c0_51], %107 {strides = array<i32>} : memref<12x128xf32, #tpu.memory_space<vmem>>, vector<3x128xf32>,
    %109 = vector.extract_strided_slice %84 {offsets = [9, 0], sizes = [3, 128], strides = [1, 1]} : vector<12x128xf32> to vector<3x128xf32>
    %c3_52 = arith.constant 3 : index
    %c0_53 = arith.constant 0 : index
    %c0_54 = arith.constant 0 : index
    %110 = vector.load %arg5[%c3_52, %c0_53, %c0_54] : memref<4x128x128xf32, #tpu.memory_space<vmem>>, vector<1x128x128xf32>
    %111 = vector.shape_cast %110 : vector<1x128x128xf32> to vector<128x128xf32>
    %cst_55 = arith.constant dense<0.000000e+00> : vector<3x128xf32>
    %112 = tpu.matmul %109, %111, %cst_55 {dimension_numbers = #tpu.dot_dimension_numbers<[1], [0], [0], [1], [0, 0, 1, 1], [], []>} : vector<3x128xf32>, vector<128x128xf32>, vector<3x128xf32> -> vector<3x128xf32>
    %c3_56 = arith.constant 3 : index
    %c0_57 = arith.constant 0 : index
    %113 = vector.load %arg6[%c3_56, %c0_57] : memref<4x128xf32, #tpu.memory_space<vmem>>, vector<1x128xf32>
    %114 = vector.broadcast %113 : vector<1x128xf32> to vector<3x128xf32>
    %115 = arith.addf %112, %114 : vector<3x128xf32>
    %c9 = arith.constant 9 : index
    %c0_58 = arith.constant 0 : index
    %116 = vector.load %arg13[%c9, %c0_58] : memref<12x128xf32, #tpu.memory_space<vmem>>, vector<3x128xf32>
    tpu.vector_store %arg13[%c9, %c0_58], %115 {strides = array<i32>} : memref<12x128xf32, #tpu.memory_space<vmem>>, vector<3x128xf32>,
    %c0_59 = arith.constant 0 : index
    %c0_60 = arith.constant 0 : index
    %117 = vector.load %arg13[%c0_59, %c0_60] : memref<12x128xf32, #tpu.memory_space<vmem>>, vector<12x128xf32>
    %c0_61 = arith.constant 0 : index
    %c0_62 = arith.constant 0 : index
    %118 = vector.load %arg8[%c0_61, %c0_62] : memref<3x12xf32, #tpu.memory_space<vmem>>, vector<3x12xf32>
    %119 = vector.extract_strided_slice %118 {offsets = [0, 0], sizes = [1, 12], strides = [1, 1]} : vector<3x12xf32> to vector<1x12xf32>
    %120 = vector.broadcast %119 : vector<1x12xf32> to vector<8x12xf32>
    %121 = arith.mulf %72, %120 : vector<8x12xf32>
    %cst_63 = arith.constant dense<0.000000e+00> : vector<8x128xf32>
    %122 = tpu.matmul %121, %117, %cst_63 {dimension_numbers = #tpu.dot_dimension_numbers<[1], [0], [0], [1], [0, 0, 1, 1], [], []>} : vector<8x12xf32>, vector<12x128xf32>, vector<8x128xf32> -> vector<8x128xf32>
    %c0_64 = arith.constant 0 : index
    %c0_65 = arith.constant 0 : index
    %c0_66 = arith.constant 0 : index
    %123 = vector.load %arg9[%c0_64, %c0_65, %c0_66] : memref<1x8x128xf32, #tpu.memory_space<vmem>>, vector<1x8x128xf32>
    %124 = vector.shape_cast %123 : vector<1x8x128xf32> to vector<8x128xf32>
    %125 = vector.shape_cast %122 : vector<8x128xf32> to vector<1x8x128xf32>
    tpu.vector_store %arg9[%c0_64, %c0_65, %c0_66], %125 {strides = array<i32>} : memref<1x8x128xf32, #tpu.memory_space<vmem>>, vector<1x8x128xf32>,
    %126 = vector.extract_strided_slice %118 {offsets = [1, 0], sizes = [1, 12], strides = [1, 1]} : vector<3x12xf32> to vector<1x12xf32>
    %127 = vector.broadcast %126 : vector<1x12xf32> to vector<8x12xf32>
    %128 = arith.mulf %72, %127 : vector<8x12xf32>
    %cst_67 = arith.constant dense<0.000000e+00> : vector<8x128xf32>
    %129 = tpu.matmul %128, %117, %cst_67 {dimension_numbers = #tpu.dot_dimension_numbers<[1], [0], [0], [1], [0, 0, 1, 1], [], []>} : vector<8x12xf32>, vector<12x128xf32>, vector<8x128xf32> -> vector<8x128xf32>
    %c0_68 = arith.constant 0 : index
    %c0_69 = arith.constant 0 : index
    %c0_70 = arith.constant 0 : index
    %130 = vector.load %arg10[%c0_68, %c0_69, %c0_70] : memref<1x8x128xf32, #tpu.memory_space<vmem>>, vector<1x8x128xf32>
    %131 = vector.shape_cast %130 : vector<1x8x128xf32> to vector<8x128xf32>
    %132 = vector.shape_cast %129 : vector<8x128xf32> to vector<1x8x128xf32>
    tpu.vector_store %arg10[%c0_68, %c0_69, %c0_70], %132 {strides = array<i32>} : memref<1x8x128xf32, #tpu.memory_space<vmem>>, vector<1x8x128xf32>,
    %133 = vector.extract_strided_slice %118 {offsets = [2, 0], sizes = [1, 12], strides = [1, 1]} : vector<3x12xf32> to vector<1x12xf32>
    %134 = vector.broadcast %133 : vector<1x12xf32> to vector<8x12xf32>
    %135 = arith.mulf %72, %134 : vector<8x12xf32>
    %cst_71 = arith.constant dense<0.000000e+00> : vector<8x128xf32>
    %136 = tpu.matmul %135, %117, %cst_71 {dimension_numbers = #tpu.dot_dimension_numbers<[1], [0], [0], [1], [0, 0, 1, 1], [], []>} : vector<8x12xf32>, vector<12x128xf32>, vector<8x128xf32> -> vector<8x128xf32>
    %c0_72 = arith.constant 0 : index
    %c0_73 = arith.constant 0 : index
    %c0_74 = arith.constant 0 : index
    %137 = vector.load %arg11[%c0_72, %c0_73, %c0_74] : memref<1x8x128xf32, #tpu.memory_space<vmem>>, vector<1x8x128xf32>
    %138 = vector.shape_cast %137 : vector<1x8x128xf32> to vector<8x128xf32>
    %139 = vector.shape_cast %136 : vector<8x128xf32> to vector<1x8x128xf32>
    tpu.vector_store %arg11[%c0_72, %c0_73, %c0_74], %139 {strides = array<i32>} : memref<1x8x128xf32, #tpu.memory_space<vmem>>, vector<1x8x128xf32>,
    return
  }
  func.func @transform_0(%arg0: i32) -> (i32, i32, i32) {
    %c0_i32 = arith.constant 0 : i32
    %c0_i32_0 = arith.constant 0 : i32
    %c0_i32_1 = arith.constant 0 : i32
    return %arg0, %c0_i32, %c0_i32_0 : i32, i32, i32
  }
  func.func @transform_1(%arg0: i32) -> (i32, i32) {
    %c0_i32 = arith.constant 0 : i32
    %c0_i32_0 = arith.constant 0 : i32
    %c0_i32_1 = arith.constant 0 : i32
    return %c0_i32, %c0_i32_0 : i32, i32
  }
  func.func @transform_2(%arg0: i32) -> (i32, i32) {
    %c0_i32 = arith.constant 0 : i32
    %c0_i32_0 = arith.constant 0 : i32
    %c0_i32_1 = arith.constant 0 : i32
    return %c0_i32, %c0_i32_0 : i32, i32
  }
  func.func @transform_3(%arg0: i32) -> (i32, i32) {
    %c0_i32 = arith.constant 0 : i32
    %c0_i32_0 = arith.constant 0 : i32
    %c0_i32_1 = arith.constant 0 : i32
    return %c0_i32, %c0_i32_0 : i32, i32
  }
  func.func @transform_4(%arg0: i32) -> (i32, i32, i32) {
    %c0_i32 = arith.constant 0 : i32
    %c0_i32_0 = arith.constant 0 : i32
    %c0_i32_1 = arith.constant 0 : i32
    %c0_i32_2 = arith.constant 0 : i32
    return %c0_i32, %c0_i32_0, %c0_i32_1 : i32, i32, i32
  }
  func.func @transform_5(%arg0: i32) -> (i32, i32) {
    %c0_i32 = arith.constant 0 : i32
    %c0_i32_0 = arith.constant 0 : i32
    %c0_i32_1 = arith.constant 0 : i32
    return %c0_i32, %c0_i32_0 : i32, i32
  }
  func.func @transform_6(%arg0: i32) -> (i32, i32) {
    %c0_i32 = arith.constant 0 : i32
    %c0_i32_0 = arith.constant 0 : i32
    %c0_i32_1 = arith.constant 0 : i32
    return %c0_i32, %c0_i32_0 : i32, i32
  }
  func.func @transform_7(%arg0: i32) -> (i32, i32) {
    %c0_i32 = arith.constant 0 : i32
    %c0_i32_0 = arith.constant 0 : i32
    %c0_i32_1 = arith.constant 0 : i32
    return %c0_i32, %c0_i32_0 : i32, i32
  }
  func.func @transform_8(%arg0: i32) -> (i32, i32, i32) {
    %c0_i32 = arith.constant 0 : i32
    %c0_i32_0 = arith.constant 0 : i32
    %c0_i32_1 = arith.constant 0 : i32
    return %arg0, %c0_i32, %c0_i32_0 : i32, i32, i32
  }
  func.func @transform_9(%arg0: i32) -> (i32, i32, i32) {
    %c0_i32 = arith.constant 0 : i32
    %c0_i32_0 = arith.constant 0 : i32
    %c0_i32_1 = arith.constant 0 : i32
    return %arg0, %c0_i32, %c0_i32_0 : i32, i32, i32
  }
  func.func @transform_10(%arg0: i32) -> (i32, i32, i32) {
    %c0_i32 = arith.constant 0 : i32
    %c0_i32_0 = arith.constant 0 : i32
    %c0_i32_1 = arith.constant 0 : i32
    return %arg0, %c0_i32, %c0_i32_0 : i32, i32, i32
  }
  func.func @transform_11(%arg0: i32) -> (i32, i32, i32) {
    %c0_i32 = arith.constant 0 : i32
    %c0_i32_0 = arith.constant 0 : i32
    %c0_i32_1 = arith.constant 0 : i32
    return %arg0, %c0_i32, %c0_i32_0 : i32, i32, i32
  }
}

</mosaic_0001>

<bundles_post_ra>
// kernel: tpu_custom_call.1
= control target key start
LH: loop header
LB: loop body
LE: loop exit
PB: predicated region body
PF: predicated region fallthrough
CT: control target
= control target key end

     0   :  { %s3262_s0 = inlined_call_operand.vmem [shape: f32[2,8,128], index: 0, kind: input, shape index: {}]   ;;  %s3263_s1 = inlined_call_operand.vmem [shape: f32[128,128], index: 1, kind: input, shape index: {}]   ;;  %s3264_s2 = inlined_call_operand.vmem [shape: f32[128,12], index: 2, kind: input, shape index: {}]   ;;  %s3265_s3 = inlined_call_operand.vmem [shape: f32[12,128], index: 3, kind: input, shape index: {}]   ;;  %s3266_s4 = inlined_call_operand.hbm [shape: f32[4,128,128], index: 4, kind: input, shape index: {}]   ;;  %s3267_s5 = inlined_call_operand.vmem [shape: f32[4,128], index: 5, kind: input, shape index: {}]   ;;  %s3268_s6 = inlined_call_operand.vmem [shape: f32[128,4], index: 6, kind: input, shape index: {}]   ;;  %s3269_s7 = inlined_call_operand.vmem [shape: f32[3,12], index: 7, kind: input, shape index: {}]   ;;  %s3270_s8 = inlined_call_operand.hbm [shape: f32[2,8,128], index: 8, kind: output, shape index: {0}]   ;;  %s3271_s9 = inlined_call_operand.hbm [shape: f32[2,8,128], index: 9, kind: output, shape index: {1}]   ;;  %s3272_s10 = inlined_call_operand.hbm [shape: f32[2,8,128], index: 10, kind: output, shape index: {2}]   ;;  %s3273_s11 = inlined_call_operand.hbm [shape: f32[2,1,128], index: 11, kind: output, shape index: {3}]  }
   0x1   :  { %3279 = sst [smem:[#allocation17_spill]] %s3262_s0 }
   0x2   :  { %3280 = sst [smem:[#allocation18_spill]] %s3263_s1 }
   0x3   :  { %3281 = sst [smem:[#allocation19_spill]] %s3264_s2 }
   0x4   :  { %3282 = sst [smem:[#allocation20_spill]] %s3265_s3 }
   0x5   :  { %17 = vsyncpa [#allocation4], 0 }
   0x6   :  { %18 = vsyncpa [#allocation5], 0 }
   0x7   :  { %20 = vsyncpa [#allocation5 + $0x1], 0 }
   0x8   :  { %21 = vsyncpa [#allocation8], 0 }
   0x9   :  { %23 = vsyncpa [#allocation8 + $0x1], 0 }
   0xa   :  { %24 = vsyncpa [#allocation11], 0 }
   0xb   :  { %26 = vsyncpa [#allocation11 + $0x1], 0  ;;  %s2714_s17 = smov 0   ;;  %s2716_s18 = smov 0  }
   0xc   :  { %s2718_s19 = smov 0   ;;  %s2720_s20 = smov 0  }
   0xd LB: > { %s2735_s21 = sadd.s32 4294967295, %s2641_s20   ;;  %s3274_s22 = sadd.s32 4294967294, %s2641_s20   ;;  %s2641_s20 = sphi %s2720_s20, %s3303_s20   ;;  %s2637_s19 = sphi %s2718_s19, %s3302_s19   ;;  %s2633_s18 = sphi %s2716_s18, %s3301_s18   ;;  %s2629_s17 = sphi %s2714_s17, %s3300_s17  }
   0xe   : > { %s2739_s23 = sadd.s32 1, %s2641_s20   ;;  %s212_s24 = sadd.s32 1, %s2637_s19 }
   0xf   : > { %s209_s25 = ssub.s32 %s2641_s20, %s2739_s23  ;;  %p222_p0 = scmp.ne.s32.totalorder %s2637_s19, %s2633_s18 }
  0x10   : > { %p210_p1 = scmp.eq.s32.totalorder %s209_s25, 0  ;;  %p223_p2 = scmp.eq.s32.totalorder %s2735_s21, 1 }
  0x11   : > { %p228_p3 = scmp.ne.s32.totalorder %s2633_s18, %s2629_s17  ;;  %p229_p4 = scmp.eq.s32.totalorder %s3274_s22, 1 }
  0x12   : > { %s2752_s26 = scalar_select %p210_p1, %s2637_s19, %s212_s24  }
  0x13   : > { %p2754_p5 = por %p223_p2, %p222_p0  ;;  %p2758_p6 = por %p229_p4, %p228_p3 }
  0x14   : > { %3283 = sst [smem:[#allocation16_spill]] %s2752_s26  ;;  %p1750_p7 = scmp.ge.s32.totalorder %s2641_s20, 1 }
  0x15   : > { %s3284_s27 = scalar_select %p2754_p5, 1, 0 }
  0x16   : > { %s3285_s28 = scalar_select %p2758_p6, 1, 0 }
  0x17   : > { %p314_p8 = scmp.lt.s32.totalorder %s2641_s20, 3  ;;  %p3275_p9 = scmp.eq.s32.totalorder %s2735_s21, 0 }
  0x18   : > { %s2643_s30 = smov [#allocation3]   ;;  %s2455_s16 = scalar_lea.hbm %s3266_s4, 8192 }
  0x19   : > { %p2765_p10 = pnand %p1750_p7, %p314_p8  ;;  %s335_s12 = sshll.u32 %s2643_s30, 4  ;;  %s336_s12 = int_to_ptr.vmem [resolvable:$true] %s335_s12 }
  0x1a   : > { %p2456_p13 = scmp.ne.s32.totalorder %s3266_s4, %s2455_s16  ;;  %p2462_p3 = scmp.lt.u32.totalorder %s2455_s16, %s3266_s4 }
  0x1b   : > { %s3286_s29 = scalar_select %p2765_p10, 1, 0 }
  0x1c   : > { %p2374_p11 = pneg %p2765_p10 }
  0x1e   : > { %p2773_p12 = pnand %p3275_p9, %p2374_p11 }
  0x20   : > { %p2457_p0 = pneg %p2773_p12 }
  0x22   : > { %p2458_p1 = pnand %p2457_p0, %p2456_p13 }
  0x24   : > { %p2459_p2 = pneg %p2458_p1 }
  0x26   : > { %p2464_p4 = pnand %p2462_p3, %p2459_p2 }
  0x28   : > { %2467 = shalt.err (!%p2464_p4)
}
  0x29   : > { %s2468_s26 = scalar_lea.vmem %s336_s12, 8192  ;;  %p2476_p9 = scmp.lt.s32.totalorder %s336_s12, %s336_s12 }
  0x2a   : > { %p2469_p7 = scmp.ne.s32.totalorder %s336_s12, %s2468_s26  ;;  %p2477_p6 = scmp.lt.s32.totalorder %s2468_s26, %s2468_s26 }
  0x2c   : > { %p2471_p8 = pnand %p2469_p7, %p2457_p0  ;;  %p2478_p5 = por %p2477_p6, %p2476_p9 }
  0x2e   : > { %p2472_p11 = pneg %p2471_p8 }
  0x30   : > { %p2479_p10 = pnand %p2478_p5, %p2472_p11 }
  0x32   : > { %2482 = shalt.err (!%p2479_p10)
}
  0x33   : > { %s2644_s14 = smov 128   ;;  %s2645_s15 = smov 8  }
  0x34   : > { %2377 = dma.hbm_to_vmem [thread:$0]  (!%p2773_p12), %s3266_s4, 8192, %s336_s12, [#allocation4], %s2644_s14, %s2644_s14, %s2645_s15  }
  0x35   : > { %p3288_p13 = scmp.ne.s32.totalorder %s3286_s29, 0 }
  0x36   : > { %p3289_p1 = scmp.eq.s32.totalorder (!%p3288_p13), %s2735_s21, 0 }
  0x37   : > { %367 = sbr.rel (%p3288_p13) target bundleno = 1426 (0x592), region = 52 }
  0x3e   : > { %2612 = dma.done.wait (%p3289_p1), [#allocation4], 8192   ;;  %p3290_p0 = pmov %p3289_p1 }
  0x3f   : > { %p420_p5 = scmp.lt.s32.totalorder %s2735_s21, 1  ;;  %v2646_v0 = vmov 0.0|0.0   ;;  %s3291_s0 = sld [smem:[#allocation17_spill]]  ;;  %v556_v6 = vld [vmem:[%s3268_s6] sm:$0xff]  ;;  %v557_v7 = vld [vmem:[%s3268_s6 + $0x8] sm:$0xff]  ;;  %v558_v12 = vld [vmem:[%s3268_s6 + $0x10] sm:$0xff] }
  0x40   : > { %2614 = vsyncadd (%p3290_p0), [#allocation4], 4294959104  ;;  %2182 = vmatprep.subr.bf16.mxu0 %v2646_v0  ;;  %2206 = vmatprep.subr.bf16.mxu1 %v2646_v0  ;;  %s3292_s1 = sld [smem:[#allocation18_spill]]  ;;  %v2207_v8 = vpack.c.bf16 %v557_v7, %v556_v6  ;;  %v559_v13 = vld [vmem:[%s3268_s6 + $0x18] sm:$0xff]  ;;  %v560_v18 = vld [vmem:[%s3268_s6 + $0x20] sm:$0xff]  ;;  %vm2647_vm0 = vmmov 0  }
  0x41   : > { %s421_s22 = scalar_select %p420_p5, %s2735_s21, 1  ;;  %v2210_v14 = vpack.c.bf16 %v559_v13, %v558_v12  ;;  %v561_v19 = vld [vmem:[%s3268_s6 + $0x28] sm:$0xff]  ;;  %v562_v24 = vld [vmem:[%s3268_s6 + $0x30] sm:$0xff]  ;;  %v563_v25 = vld [vmem:[%s3268_s6 + $0x38] sm:$0xff]  ;;  %v2648_v46 = vmov 0.0   ;;  %vm760_vm4 = vcmask 97280  }
  0x42   : > { %2208 = vmatpush3.bf16.msra.mxu1 %v2207_v8  ;;  %v2213_v20 = vpack.c.bf16 %v561_v19, %v560_v18  ;;  %v2216_v26 = vpack.c.bf16 %v563_v25, %v562_v24  ;;  %v564_v30 = vld [vmem:[%s3268_s6 + $0x40] sm:$0xff]  ;;  %v565_v31 = vld [vmem:[%s3268_s6 + $0x48] sm:$0xff]  ;;  %v566_v36 = vld [vmem:[%s3268_s6 + $0x50] sm:$0xff]  ;;  %1943 = vmatprep.mubr.msk.f32.mxu0 %vm2647_vm0, %v2648_v46  ;;  %s3293_s2 = sld [smem:[#allocation19_spill]]  ;;  %vm814_vm5 = vcmask 64512   ;;  %vm644_vm6 = vcmask 31744  }
  0x43   : > { %s1758_s26 = sshll.u32 %s421_s22, 3  ;;  %2209 = vmatprep.subr.bf16.mxu1 %v2646_v0  ;;  %v2219_v32 = vpack.c.bf16 %v565_v31, %v564_v30  ;;  %v567_v37 = vld [vmem:[%s3268_s6 + $0x58] sm:$0xff]  ;;  %v568_v41 = vld [vmem:[%s3268_s6 + $0x60] sm:$0xff]  ;;  %v569_v42 = vld [vmem:[%s3268_s6 + $0x68] sm:$0xff]  ;;  %1978 = vmatprep.mubr.msk.f32.mxu1 %vm2647_vm0, %v2648_v46  ;;  %s3294_s3 = sld [smem:[#allocation20_spill]]  ;;  %vm1107_vm7 = vcmask 1041408  }
  0x44   : > { %v2222_v39 = vpack.c.bf16 %v567_v37, %v566_v36  ;;  %v2225_v47 = vpack.c.bf16 %v569_v42, %v568_v41  ;;  %v570_v49 = vld [vmem:[%s3268_s6 + $0x70] sm:$0xff]  ;;  %v571_v50 = vld [vmem:[%s3268_s6 + $0x78] sm:$0xff]  ;;  %s3073_s15 = sand.u32 1, %s2633_s18   ;;  %vm1289_vm8 = vcmask 1043456   ;;  %vm2649_vm9 = vmmov 1   ;;  %s1777_s14 = sshll.u32 %s2735_s21, 4 }
  0x45   : > { %s423_s29 = scalar_lea.vmem %s3291_s0, %s1758_s26  ;;  %v2228_v51 = vpack.c.bf16 %v571_v50, %v570_v49  ;;  %s419_s24 = scalar_lea.vmem [#allocation10], %s3073_s15  ;;  %vm2352_vm10 = vmpackc.low %vm1289_vm8, %vm2649_vm9 }
  0x46   : > { %v2806_v1 = vld [vmem:[%s423_s29] sm:$0xff]  ;;  %v439_v3 = vld [vmem:[%s3292_s1 + $0x8] sm:$0xff]  ;;  %v440_v9 = vld [vmem:[%s3292_s1 + $0x10] sm:$0xff]  ;;  %2211 = vmatpush3.bf16.msra.mxu1 %v2210_v14  ;;  %s1589_s25 = sshll.u32 %s419_s24, 4  ;;  %s3108_s12 = scalar_lea.hbm %s3273_s11, %s1777_s14  ;;  %s1590_s25 = int_to_ptr.vmem [resolvable:$true] %s1589_s25 }
  0x47   : > { %v438_v2 = vld [vmem:[%s3292_s1] sm:$0xff]  ;;  %v425_v4 = vmul.f32 %v2806_v1, %v2806_v1  ;;  %v441_v10 = vld [vmem:[%s3292_s1 + $0x18] sm:$0xff]  ;;  %v443_v16 = vld [vmem:[%s3292_s1 + $0x28] sm:$0xff]  ;;  %2212 = vmatprep.subr.bf16.mxu1 %v2646_v0  ;;  %s1538_s13 = scalar_lea.sflag [#allocation11], %s3073_s15  ;;  %s2483_s29 = scalar_lea.vmem %s1590_s25, 16 }
  0x48   : > { %v2183_v5 = vpack.c.bf16 %v439_v3, %v438_v2  ;;  %v2186_v11 = vpack.c.bf16 %v441_v10, %v440_v9  ;;  %v442_v15 = vld [vmem:[%s3292_s1 + $0x20] sm:$0xff]  ;;  %v444_v21 = vld [vmem:[%s3292_s1 + $0x30] sm:$0xff]  ;;  %v445_v22 = vld [vmem:[%s3292_s1 + $0x38] sm:$0xff]  ;;  %p2484_p6 = scmp.ne.s32.totalorder %s1590_s25, %s2483_s29  ;;  %p3295_p9 = scmp.ne.s32.totalorder %s3284_s27, 0 }
  0x49   : > { %426 = vadd.xlane.f32.xlu0 %v425_v4  ;;  %v2189_v17 = vpack.c.bf16 %v443_v16, %v442_v15  ;;  %v2192_v23 = vpack.c.bf16 %v445_v22, %v444_v21  ;;  %v446_v27 = vld [vmem:[%s3292_s1 + $0x40] sm:$0xff]  ;;  %v447_v28 = vld [vmem:[%s3292_s1 + $0x48] sm:$0xff]  ;;  %v448_v33 = vld [vmem:[%s3292_s1 + $0x50] sm:$0xff]  ;;  %v524_v22 = vlaneseq  ;;  %s2650_s16 = smov [#allocation10]  }
  0x4a   : > { %2184 = vmatpush3.bf16.msra.mxu0 %v2183_v5  ;;  %2214 = vmatpush3.bf16.msra.mxu1 %v2213_v20  ;;  %v2195_v29 = vpack.c.bf16 %v447_v28, %v446_v27  ;;  %v449_v34 = vld [vmem:[%s3292_s1 + $0x58] sm:$0xff]  ;;  %v450_v38 = vld [vmem:[%s3292_s1 + $0x60] sm:$0xff]  ;;  %v451_v40 = vld [vmem:[%s3292_s1 + $0x68] sm:$0xff]  ;;  %p2485_p10 = pnand %p2484_p6, %p3295_p9  ;;  %s2487_s30 = sshll.u32 %s2650_s16, 4  ;;  %s2488_s30 = int_to_ptr.vmem [resolvable:$false] %s2487_s30 }
  0x4b   : > { %2185 = vmatprep.subr.bf16.mxu0 %v2646_v0  ;;  %2215 = vmatprep.subr.bf16.mxu1 %v2646_v0  ;;  %v2198_v35 = vpack.c.bf16 %v449_v34, %v448_v33  ;;  %v2201_v43 = vpack.c.bf16 %v451_v40, %v450_v38  ;;  %v452_v44 = vld [vmem:[%s3292_s1 + $0x70] sm:$0xff]  ;;  %v453_v45 = vld [vmem:[%s3292_s1 + $0x78] sm:$0xff]  ;;  %v670_v59 = vld [vmem:[%s3293_s2] sm:$0xff]  ;;  %s2489_s0 = scalar_lea.vmem %s2488_s30, 32  ;;  %p2490_p2 = scmp.lt.s32.totalorder %s1590_s25, %s2488_s30 }
  0x4c   : > { %v2204_v48 = vpack.c.bf16 %v453_v45, %v452_v44  ;;  %v671_v60 = vld [vmem:[%s3293_s2 + $0x8] sm:$0xff]  ;;  %v672_v2 = vld [vmem:[%s3293_s2 + $0x10] sm:$0xff]  ;;  %v673_v3 = vld [vmem:[%s3293_s2 + $0x18] sm:$0xff]  ;;  %p2486_p12 = pneg %p2485_p10  ;;  %p2491_p3 = scmp.lt.s32.totalorder %s2489_s0, %s2483_s29 }
  0x4d   : > { %v2231_v62 = vpack.c.bf16 %v671_v60, %v670_v59  ;;  %v2234_v4 = vpack.c.bf16 %v673_v3, %v672_v2  ;;  %v675_v5 = vld [vmem:[%s3293_s2 + $0x28] sm:$0xff]  ;;  %v676_v7 = vld [vmem:[%s3293_s2 + $0x30] sm:$0xff]  ;;  %v677_v8 = vld [vmem:[%s3293_s2 + $0x38] sm:$0xff] }
  0x4e   : > { %2187 = vmatpush3.bf16.msra.mxu0 %v2186_v11  ;;  %2217 = vmatpush3.bf16.msra.mxu1 %v2216_v26  ;;  %v2240_v9 = vpack.c.bf16 %v677_v8, %v676_v7  ;;  %v678_v10 = vld [vmem:[%s3293_s2 + $0x40] sm:$0xff]  ;;  %v679_v11 = vld [vmem:[%s3293_s2 + $0x48] sm:$0xff]  ;;  %v680_v13 = vld [vmem:[%s3293_s2 + $0x50] sm:$0xff]  ;;  %p2492_p4 = por %p2491_p3, %p2490_p2 }
  0x4f   : > { %2188 = vmatprep.subr.bf16.mxu0 %v2646_v0  ;;  %2218 = vmatprep.subr.bf16.mxu1 %v2646_v0  ;;  %v2243_v12 = vpack.c.bf16 %v679_v11, %v678_v10  ;;  %v681_v14 = vld [vmem:[%s3293_s2 + $0x58] sm:$0xff]  ;;  %v682_v16 = vld [vmem:[%s3293_s2 + $0x60] sm:$0xff]  ;;  %v684_v19 = vld [vmem:[%s3293_s2 + $0x70] sm:$0xff] }
  0x50   : > { %v2246_v15 = vpack.c.bf16 %v681_v14, %v680_v13  ;;  %v685_v20 = vld [vmem:[%s3293_s2 + $0x78] sm:$0xff]  ;;  %v898_v60 = vld [vmem:[#allocation3 + $0x10] sm:$0xff]  ;;  %v903_v11 = vld [vmem:[#allocation3 + $0x38] sm:$0xff]  ;;  %p2493_p7 = pnand %p2492_p4, %p2486_p12 }
  0x51   : > { %v2252_v21 = vpack.c.bf16 %v685_v20, %v684_v19  ;;  %v990_v59 = vld [vmem:[#allocation3 + $0x88] sm:$0xff]  ;;  %v991_v2 = vld [vmem:[#allocation3 + $0x90] sm:$0xff]  ;;  %v996_v13 = vld [vmem:[#allocation3 + $0xb8] sm:$0xff] }
  0x52   : > { %2190 = vmatpush3.bf16.msra.mxu0 %v2189_v17  ;;  %2220 = vmatpush3.bf16.msra.mxu1 %v2219_v32  ;;  %v683_v17 = vld [vmem:[%s3293_s2 + $0x68] sm:$0xff]  ;;  %v994_v7 = vld [vmem:[#allocation3 + $0xa8] sm:$0xff]  ;;  %v902_v10 = vld [vmem:[#allocation3 + $0x30] sm:$0xff] }
  0x53   : > { %2191 = vmatprep.subr.bf16.mxu0 %v2646_v0  ;;  %2221 = vmatprep.subr.bf16.mxu1 %v2646_v0  ;;  %v2249_v18 = vpack.c.bf16 %v683_v17, %v682_v16  ;;  %v2264_v14 = vpack.c.bf16 %v903_v11, %v902_v10  ;;  %v904_v16 = vld [vmem:[#allocation3 + $0x40] sm:$0xff]  ;;  %v905_v17 = vld [vmem:[#allocation3 + $0x48] sm:$0xff] }
  0x56   : > { %2193 = vmatpush3.bf16.msra.mxu0 %v2192_v23  ;;  %2223 = vmatpush3.bf16.msra.mxu1 %v2222_v39  ;;  %v525_v23 = vand.u32 127, %v524_v22 }
  0x57   : > { %2194 = vmatprep.subr.bf16.mxu0 %v2646_v0  ;;  %2224 = vmatprep.subr.bf16.mxu1 %v2646_v0 }
  0x58   : > { %vm526_vm3 = vcmp.lt.s32.totalorder %v525_v23, 16  ;;  %v998_v23 = vld [vmem:[#allocation3 + $0xc8] sm:$0xff] }
  0x5a   : > { %2196 = vmatpush3.bf16.msra.mxu0 %v2195_v29  ;;  %2226 = vmatpush3.bf16.msra.mxu1 %v2225_v47 }
  0x5b   : > { %2197 = vmatprep.subr.bf16.mxu0 %v2646_v0  ;;  %2227 = vmatprep.subr.bf16.mxu1 %v2646_v0 }
  0x5e   : > { %2199 = vmatpush3.bf16.msra.mxu0 %v2198_v35  ;;  %2229 = vmatpush3.bf16.msra.mxu1 %v2228_v51 }
  0x5f   : > { %2200 = vmatprep.subr.bf16.mxu0 %v2646_v0 }
  0x62   : > { %2202 = vmatpush3.bf16.msra.mxu0 %v2201_v43 }
  0x63   : > { %2203 = vmatprep.subr.bf16.mxu0 %v2646_v0 }
  0x66   : > { %2205 = vmatpush3.bf16.msra.mxu0 %v2204_v48 }
  0x67   : > { %2230 = vmatprep.subr.bf16.mxu0 %v2646_v0 }
  0xd6   : > { %v427_v52 = vpop.xlane.xlu0 %426 }
  0xd7   : > { %2433 = vrsqrt.f32 %v427_v52  ;;  %vm430_vm1 = vcmp.eq.f32.partialorder %v427_v52, inf  ;;  %v433_v55 = vand.u32 2147483648, %v427_v52  ;;  %vm432_vm2 = vcmp.eq.f32.partialorder %v427_v52, 0.0 }
  0xe1   : > { %v2434_v53 = vpop.eup %2433 }
  0xe2   : > { %v429_v54 = vmul.f32 %v2434_v53, %v427_v52 }
  0xe4   : > { %v431_v56 = vsel %vm430_vm1, %v427_v52, %v429_v54 }
  0xe5   : > { %v434_v57 = vsel %vm432_vm2, %v433_v55, %v431_v56  ;;  %v896_v55 = vld [vmem:[#allocation3] sm:$0xff]  ;;  %v897_v56 = vld [vmem:[#allocation3 + $0x8] sm:$0xff] }
  0xe6   : > { %v435_v58 = vmax.f32 %v434_v57, 1e-12  ;;  %v989_v57 = vld [vmem:[#allocation3 + $0x80] sm:$0xff] }
  0xe8   : > { %2435 = vrcp.f32 %v435_v58  ;;  %v2255_v58 = vpack.c.bf16 %v897_v56, %v896_v55  ;;  %v1280_v56 = vld [vmem:[%s3269_s7] sm:$0x7] }
  0xf2   : > { %v2436_v61 = vpop.eup %2435 }
  0xf3   : > { %v2932_v63 = vmul.f32 %v2436_v61, %v2806_v1  ;;  %v674_v1 = vld [vmem:[%s3293_s2 + $0x20] sm:$0xff]  ;;  %v899_v61 = vld [vmem:[#allocation3 + $0x18] sm:$0xff] }
  0xf4   : > { %v2237_v6 = vpack.c.bf16 %v675_v5, %v674_v1  ;;  %v2258_v3 = vpack.c.bf16 %v899_v61, %v898_v60  ;;  %v900_v1 = vld [vmem:[#allocation3 + $0x20] sm:$0xff]  ;;  %v901_v5 = vld [vmem:[#allocation3 + $0x28] sm:$0xff] }
  0xf5   : > { %1944 = vmatmul.mubr.f32.vlgmr.msra.gmra.mrb[0].mxu0 %v2932_v63  ;;  %2016 = vmatprep.subr.mxu1 %v2932_v63  ;;  %v2261_v8 = vpack.c.bf16 %v901_v5, %v900_v1 }
  0xf6   : > { %2232 = vmatpush3.bf16.msra.mxu0 %v2231_v62  ;;  %2013 = vmatprep.mubr.msk.f32.mxu0 %vm2647_vm0, %v2648_v46  ;;  %v2279_v62 = vpack.c.bf16 %v990_v59, %v989_v57 }
  0xf7   : > { %2233 = vmatprep.subr.bf16.mxu0 %v2646_v0 }
  0xfa   : > { %2235 = vmatpush3.bf16.msra.mxu0 %v2234_v4 }
  0xfb   : > { %2236 = vmatprep.subr.bf16.mxu0 %v2646_v0 }
  0xfe   : > { %2238 = vmatpush3.bf16.msra.mxu0 %v2237_v6  ;;  %v993_v6 = vld [vmem:[#allocation3 + $0xa0] sm:$0xff] }
  0xff   : > { %2239 = vmatprep.subr.bf16.mxu0 %v2646_v0 }
 0x102   : > { %2241 = vmatpush3.bf16.msra.mxu0 %v2240_v9  ;;  %v2285_v9 = vpack.c.bf16 %v994_v7, %v993_v6 }
 0x103   : > { %2242 = vmatprep.subr.bf16.mxu0 %v2646_v0 }
 0x106   : > { %2244 = vmatpush3.bf16.msra.mxu0 %v2243_v12  ;;  %v995_v12 = vld [vmem:[#allocation3 + $0xb0] sm:$0xff] }
 0x107   : > { %2245 = vmatprep.subr.bf16.mxu0 %v2646_v0 }
 0x10a   : > { %2247 = vmatpush3.bf16.msra.mxu0 %v2246_v15  ;;  %v2288_v15 = vpack.c.bf16 %v996_v13, %v995_v12 }
 0x10b   : > { %2248 = vmatprep.subr.bf16.mxu0 %v2646_v0 }
 0x10e   : > { %2250 = vmatpush3.bf16.msra.mxu0 %v2249_v18  ;;  %v2267_v18 = vpack.c.bf16 %v905_v17, %v904_v16 }
 0x10f   : > { %2251 = vmatprep.subr.bf16.mxu0 %v2646_v0 }
 0x112   : > { %2253 = vmatpush3.bf16.msra.mxu0 %v2252_v21  ;;  %v997_v21 = vld [vmem:[#allocation3 + $0xc0] sm:$0xff] }
 0x113   : > { %2278 = vmatprep.subr.bf16.mxu0 %v2646_v0 }
 0x115   : > { %2014 = vmatmul.mubr.f32.vlgmr.msra.gmra.mrb[2].mxu0 %v2932_v63 }
 0x116   : > { %2088 = vmatprep.mubr.msk.f32.mxu0 %vm2647_vm0, %v2648_v46  ;;  %2280 = vmatpush3.bf16.msra.mxu0 %v2279_v62 }
 0x117   : > { %2281 = vmatprep.subr.bf16.mxu0 %v2646_v0 }
 0x1c8   : > { %v520_v24 = vpop.f32.mrb[0].mxu0 }
 0x1c9   : > { %v1945_v25 = vpop.f32.mrb[1].mxu0  ;;  %v527_v26 = vsel %vm526_vm3, %v520_v24, -1e+30  ;;  %v2291_v24 = vpack.c.bf16 %v998_v23, %v997_v21 }
 0x1ca   : > { %528 = vmax.xlane.f32.xlu0 %v527_v26  ;;  %v906_v25 = vld [vmem:[#allocation3 + $0x50] sm:$0xff] }
 0x1e8   : > { %v2992_v27 = vpop.f32.mrb[2].mxu0 }
 0x1e9   : > { %v761_v28 = vsel %vm760_vm4, %v2992_v27, -inf  ;;  %v2015_v29 = vpop.f32.mrb[3].mxu0 }
 0x1ea   : > { %v762_v30 = vrot.slane %v761_v28, 4 }
 0x1ec   : > { %v763_v31 = vmax.f32 %v761_v28, %v762_v30  ;;  %v999_v28 = vld [vmem:[#allocation3 + $0xd0] sm:$0xff] }
 0x1ee   : > { %v764_v32 = vrot.slane %v763_v31, 2 }
 0x1f0   : > { %v765_v33 = vmax.f32 %v763_v31, %v764_v32  ;;  %v1000_v31 = vld [vmem:[#allocation3 + $0xd8] sm:$0xff]  ;;  %v908_v32 = vld [vmem:[#allocation3 + $0x60] sm:$0xff] }
 0x1f2   : > { %v766_v34 = vrot.slane %v765_v33, 1 }
 0x1f4   : > { %v767_v35 = vmax.f32 %v765_v33, %v766_v34  ;;  %v909_v33 = vld [vmem:[#allocation3 + $0x68] sm:$0xff] }
 0x1f6   : > { %v768_v36 = vsub.f32 %v2992_v27, %v767_v35  ;;  %v2294_v35 = vpack.c.bf16 %v1000_v31, %v999_v28 }
 0x1f8   : > { %v769_v37 = vmul.f32 1.442695, %v768_v36  ;;  %v2273_v36 = vpack.c.bf16 %v909_v33, %v908_v32 }
 0x1fa   : > { %2437 = vpow2.f32 %v769_v37  ;;  %v1001_v37 = vld [vmem:[#allocation3 + $0xe0] sm:$0xff] }
 0x204   : > { %v2438_v38 = vpop.eup %2437 }
 0x205   : > { %v771_v39 = vsel %vm760_vm4, %v2438_v38, 0.0 }
 0x206   : > { %v772_v40 = vrot.slane %v771_v39, 4 }
 0x208   : > { %v773_v41 = vadd.f32 %v772_v40, %v771_v39 }
 0x20a   : > { %v774_v42 = vrot.slane %v773_v41, 2 }
 0x20c   : > { %v775_v43 = vadd.f32 %v774_v42, %v773_v41  ;;  %v910_v42 = vld [vmem:[#allocation3 + $0x70] sm:$0xff] }
 0x20e   : > { %v776_v44 = vrot.slane %v775_v43, 1 }
 0x210   : > { %v777_v45 = vadd.f32 %v776_v44, %v775_v43  ;;  %v911_v43 = vld [vmem:[#allocation3 + $0x78] sm:$0xff] }
 0x212   : > { %2439 = vrcp.f32 %v777_v45  ;;  %v2276_v45 = vpack.c.bf16 %v911_v43, %v910_v42 }
 0x21c   : > { %v2440_v47 = vpop.eup %2439 }
 0x21d   : > { %v779_v48 = vmul.f32 %v2440_v47, %v2438_v38  ;;  %v1002_v38 = vld [vmem:[#allocation3 + $0xe8] sm:$0xff]  ;;  %v1282_v47 = vshrl.u32 %v524_v22, 7 }
 0x21e   : > { %v2297_v41 = vpack.c.bf16 %v1002_v38, %v1001_v37  ;;  %v780_v37 = vld [vmem:[%s3294_s3] sm:$0xff] }
 0x21f   : > { %782 = vxpose.xlu1.b32.start.end [1/1] (short) (narrow) %v779_v48, 16  ;;  %v1003_v48 = vld [vmem:[#allocation3 + $0xf0] sm:$0xff]  ;;  %v1445_v55 = vsub.s32 2, %v1282_v47 }
 0x221   : > { %v1446_v60 = vrot.slane %v1280_v56, %v1445_v55  ;;  %v1089_v55 = vld [vmem:[#allocation3 + $0x120] sm:$0xff] }
 0x257   : > { %v2998_v49 = vpop.xlane.xlu0 %528 }
 0x258   : > { %v530_v50 = vsub.f32 %v527_v26, %v2998_v49  ;;  %v537_v19 = vrot.slane %v2998_v49, 4  ;;  %v907_v26 = vld [vmem:[#allocation3 + $0x58] sm:$0xff]  ;;  %v756_v29 = vsub.f32 %v2992_v27, %v2998_v49 }
 0x259   : > { %v2270_v30 = vpack.c.bf16 %v907_v26, %v906_v25 }
 0x25a   : > { %v531_v51 = vmul.f32 1.442695, %v530_v50  ;;  %v538_v20 = vmax.f32 %v2998_v49, %v537_v19  ;;  %v757_v39 = vmul.f32 1.442695, %v756_v29  ;;  %v1004_v50 = vld [vmem:[#allocation3 + $0xf8] sm:$0xff] }
 0x25c   : > { %2441 = vpow2.f32 %v531_v51  ;;  %v539_v34 = vrot.slane %v538_v20, 2  ;;  %v2300_v51 = vpack.c.bf16 %v1004_v50, %v1003_v48 }
 0x25d   : > { %2443 = vpow2.f32 %v757_v39  ;;  %v1184_v39 = vld [vmem:[#allocation3 + $0x180] sm:$0xff] }
 0x25e   : > { %v540_v40 = vmax.f32 %v538_v20, %v539_v34  ;;  %v781_v34 = vld [vmem:[%s3294_s3 + $0x8] sm:$0xf] }
 0x260   : > { %v541_v44 = vrot.slane %v540_v40, 1 }
 0x266   : > { %v2442_v52 = vpop.eup %2441 }
 0x267   : > { %1979 = vmatmul.mubr.f32.vlgmr.msra.gmra.mrb[0].mxu1 %v2442_v52  ;;  %533 = vadd.xlane.f32.xlu1 %v2442_v52  ;;  %v542_v52 = vmax.f32 %v540_v40, %v541_v44  ;;  %v2444_v57 = vpop.eup %2443  ;;  %v1185_v40 = vld [vmem:[#allocation3 + $0x188] sm:$0xff]  ;;  %v1087_v44 = vld [vmem:[#allocation3 + $0x110] sm:$0xff] }
 0x268   : > { %2017 = vmatpush3.msra.mxu1 %v2932_v63  ;;  %v992_v63 = vld [vmem:[#allocation3 + $0x98] sm:$0xff]  ;;  %v2327_v48 = vpack.c.bf16 %v1185_v40, %v1184_v39 }
 0x269   : > { %2254 = vmatprep.subr.bf16.mxu1 %v2646_v0  ;;  %v2282_v4 = vpack.c.bf16 %v992_v63, %v991_v2  ;;  %v543_v22 = vsub.f32 %v2998_v49, %v542_v52  ;;  %v1186_v52 = vld [vmem:[#allocation3 + $0x190] sm:$0xff] }
 0x26b   : > { %2283 = vmatpush3.bf16.msra.mxu0 %v2282_v4  ;;  %v544_v2 = vmul.f32 1.442695, %v543_v22 }
 0x26c   : > { %2284 = vmatprep.subr.bf16.mxu0 %v2646_v0 }
 0x26f   : > { %2286 = vmatpush3.bf16.msra.mxu0 %v2285_v9 }
 0x270   : > { %2287 = vmatprep.subr.bf16.mxu0 %v2646_v0 }
 0x273   : > { %2289 = vmatpush3.bf16.msra.mxu0 %v2288_v15 }
 0x274   : > { %2290 = vmatprep.subr.bf16.mxu0 %v2646_v0 }
 0x277   : > { %2292 = vmatpush3.bf16.msra.mxu0 %v2291_v24 }
 0x278   : > { %2293 = vmatprep.subr.bf16.mxu0 %v2646_v0 }
 0x27b   : > { %2295 = vmatpush3.bf16.msra.mxu0 %v2294_v35  ;;  %v1085_v35 = vld [vmem:[#allocation3 + $0x100] sm:$0xff] }
 0x27c   : > { %2296 = vmatprep.subr.bf16.mxu0 %v2646_v0 }
 0x27f   : > { %2298 = vmatpush3.bf16.msra.mxu0 %v2297_v41 }
 0x280   : > { %2299 = vmatprep.subr.bf16.mxu0 %v2646_v0 }
 0x283   : > { %2301 = vmatpush3.bf16.msra.mxu0 %v2300_v51 }
 0x284   : > { %2326 = vmatprep.subr.bf16.mxu0 %v2646_v0 }
 0x29f   : > { %v798_v53 = vpop.trf.xlu1 }
 0x2a0   : > { %2018 = vmatprep.mubr.msk.f32.mxu1 %vm814_vm5, %v798_v53  ;;  %v1283_v53 = vsub.s32 0, %v1282_v47 }
 0x2a3   : > { %v799_v54 = vpop.trf.xlu1 }
 0x2a4   : > { %2019 = vmatmul.mubr.msk.f32.vlgmr.msra.gmra.mrb[2].mxu1 %vm814_vm5, %v799_v54  ;;  %v1366_v54 = vsub.s32 1, %v1282_v47 }
 0x2a5   : > { %2053 = vmatprep.mubr.msk.f32.mxu1 %vm2647_vm0, %v2648_v46  ;;  %2256 = vmatpush3.bf16.msra.mxu1 %v2255_v58  ;;  %v1284_v58 = vrot.slane %v1280_v56, %v1283_v53  ;;  %v1187_v53 = vld [vmem:[#allocation3 + $0x198] sm:$0xff] }
 0x2a6   : > { %2257 = vmatprep.subr.bf16.mxu1 %v2646_v0  ;;  %v1367_v59 = vrot.slane %v1280_v56, %v1366_v54  ;;  %v1090_v56 = vld [vmem:[#allocation3 + $0x128] sm:$0xff] }
 0x2a9   : > { %2259 = vmatpush3.bf16.msra.mxu1 %v2258_v3 }
 0x2aa   : > { %2260 = vmatprep.subr.bf16.mxu1 %v2646_v0 }
 0x2ad   : > { %2262 = vmatpush3.bf16.msra.mxu1 %v2261_v8 }
 0x2ae   : > { %2263 = vmatprep.subr.bf16.mxu1 %v2646_v0 }
 0x2b1   : > { %2265 = vmatpush3.bf16.msra.mxu1 %v2264_v14 }
 0x2b2   : > { %2266 = vmatprep.subr.bf16.mxu1 %v2646_v0 }
 0x2b5   : > { %2268 = vmatpush3.bf16.msra.mxu1 %v2267_v18 }
 0x2b6   : > { %2269 = vmatprep.subr.bf16.mxu1 %v2646_v0 }
 0x2b9   : > { %2271 = vmatpush3.bf16.msra.mxu1 %v2270_v30 }
 0x2ba   : > { %2272 = vmatprep.subr.bf16.mxu1 %v2646_v0 }
 0x2bd   : > { %2274 = vmatpush3.bf16.msra.mxu1 %v2273_v36  ;;  %v1086_v36 = vld [vmem:[#allocation3 + $0x108] sm:$0xff] }
 0x2be   : > { %2275 = vmatprep.subr.bf16.mxu1 %v2646_v0  ;;  %v2303_v42 = vpack.c.bf16 %v1086_v36, %v1085_v35 }
 0x2c1   : > { %2277 = vmatpush3.bf16.msra.mxu1 %v2276_v45  ;;  %v1088_v45 = vld [vmem:[#allocation3 + $0x118] sm:$0xff] }
 0x2c2   : > { %2302 = vmatprep.subr.bf16.mxu1 %v2646_v0  ;;  %v2306_v54 = vpack.c.bf16 %v1088_v45, %v1087_v44 }
 0x2f4   : > { %v534_v27 = vpop.xlane.xlu1 %533 }
 0x2f5   : > { %2445 = vrcp.f32 %v534_v27 }
 0x2f6   : > { %2447 = vpow2.f32 %v544_v2 }
 0x2ff   : > { %v2446_v61 = vpop.eup %2445 }
 0x300   : > { %v759_v62 = vmul.f32 %v2446_v61, %v2444_v57  ;;  %v2448_v1 = vpop.eup %2447  ;;  %v2330_v57 = vpack.c.bf16 %v1187_v53, %v1186_v52  ;;  %v1091_v61 = vld [vmem:[#allocation3 + $0x130] sm:$0xff] }
 0x301   : > { %v546_v5 = vmul.f32 %v2448_v1, %v534_v27  ;;  %v1764_v53 = vld [vmem:[%s3267_s5 + $0x3] ss:$0 sm:$0xff] }
 0x302   : > { %v3030_v63 = vmul.f32 %v1284_v58, %v759_v62  ;;  %v3032_v3 = vmul.f32 %v1367_v59, %v759_v62  ;;  %v3034_v4 = vmul.f32 %v1446_v60, %v759_v62  ;;  %v1188_v58 = vld [vmem:[#allocation3 + $0x1a0] sm:$0xff]  ;;  %v1189_v59 = vld [vmem:[#allocation3 + $0x1a8] sm:$0xff]  ;;  %v2309_v60 = vpack.c.bf16 %v1090_v56, %v1089_v55  ;;  %v1092_v62 = vld [vmem:[#allocation3 + $0x138] sm:$0xff] }
 0x303   : > { %v547_v6 = vrot.slane %v546_v5, 4  ;;  %v2333_v2 = vpack.c.bf16 %v1189_v59, %v1188_v58 }
 0x305   : > { %v548_v7 = vadd.f32 %v547_v6, %v546_v5  ;;  %v2312_v6 = vpack.c.bf16 %v1092_v62, %v1091_v61 }
 0x307   : > { %v549_v8 = vrot.slane %v548_v7, 2 }
 0x309   : > { %v550_v49 = vadd.f32 %v549_v8, %v548_v7  ;;  %v1093_v7 = vld [vmem:[#allocation3 + $0x140] sm:$0xff]  ;;  %v1094_v8 = vld [vmem:[#allocation3 + $0x148] sm:$0xff] }
 0x30b   : > { %v551_v9 = vrot.slane %v550_v49, 1 }
 0x30d   : > { %v552_v10 = vadd.f32 %v551_v9, %v550_v49  ;;  %v1192_v9 = vld [vmem:[#allocation3 + $0x1c0] sm:$0xff] }
 0x30f   : > { %2449 = vrcp.f32 %v552_v10  ;;  %v1193_v10 = vld [vmem:[#allocation3 + $0x1c8] sm:$0xff] }
 0x319   : > { %v2450_v11 = vpop.eup %2449 }
 0x31a   : > { %v642_v12 = vmul.f32 %v2450_v11, %v2448_v1  ;;  %v555_v23 = vmul.f32 %v2450_v11, %v546_v5  ;;  %v1190_v1 = vld [vmem:[#allocation3 + $0x1b0] sm:$0xff]  ;;  %v1191_v5 = vld [vmem:[#allocation3 + $0x1b8] sm:$0xff]  ;;  %v2315_v11 = vpack.c.bf16 %v1094_v8, %v1093_v7 }
 0x31b   : > { %v2336_v49 = vpack.c.bf16 %v1191_v5, %v1190_v1 }
 0x33a   : > { %v638_v13 = vpop.f32.mrb[0].mxu1 }
 0x33b   : > { %v643_v14 = vmul.f32 %v642_v12, %v638_v13  ;;  %v1980_v15 = vpop.f32.mrb[1].mxu1  ;;  %v1095_v12 = vld [vmem:[#allocation3 + $0x150] sm:$0xff]  ;;  %v1096_v13 = vld [vmem:[#allocation3 + $0x158] sm:$0xff] }
 0x33c   : > { %v1194_v15 = vld [vmem:[#allocation3 + $0x1d0] sm:$0xff] }
 0x33d   : > { %v645_v16 = vsel %vm644_vm6, %v643_v14, 0.0 }
 0x33e   : > { %v646_v17 = vrot.slane %v645_v16, 4 }
 0x340   : > { %v647_v18 = vadd.f32 %v646_v17, %v645_v16  ;;  %v1195_v16 = vld [vmem:[#allocation3 + $0x1d8] sm:$0xff]  ;;  %v2318_v17 = vpack.c.bf16 %v1096_v13, %v1095_v12 }
 0x342   : > { %v648_v19 = vrot.slane %v647_v18, 2 }
 0x344   : > { %v649_v20 = vadd.f32 %v648_v19, %v647_v18  ;;  %v1097_v18 = vld [vmem:[#allocation3 + $0x160] sm:$0xff]  ;;  %v1098_v19 = vld [vmem:[#allocation3 + $0x168] sm:$0xff] }
 0x346   : > { %v650_v21 = vrot.slane %v649_v20, 1 }
 0x348   : > { %v651_v24 = vadd.f32 %v650_v21, %v649_v20  ;;  %v2342_v20 = vpack.c.bf16 %v1195_v16, %v1194_v15  ;;  %v1196_v21 = vld [vmem:[#allocation3 + $0x1e0] sm:$0xff] }
 0x34a   : > { %v652_v25 = vmul.f32 %v651_v24, %v555_v23  ;;  %v1197_v23 = vld [vmem:[#allocation3 + $0x1e8] sm:$0xff]  ;;  %v2321_v24 = vpack.c.bf16 %v1098_v19, %v1097_v18 }
 0x34c   : > { %2451 = vrcp.f32 %v652_v25  ;;  %v1099_v25 = vld [vmem:[#allocation3 + $0x170] sm:$0xff] }
 0x356   : > { %v2452_v26 = vpop.eup %2451 }
 0x357   : > { %v654_v28 = vmul.f32 %v2452_v26, %v643_v14  ;;  %v1100_v26 = vld [vmem:[#allocation3 + $0x178] sm:$0xff] }
 0x359   : > { %v655_v29 = vadd.f32 1e-10, %v654_v28  ;;  %v2345_v28 = vpack.c.bf16 %v1197_v23, %v1196_v21 }
 0x35b   : > { %2453 = vlog2.f32 %v655_v29  ;;  %v1198_v29 = vld [vmem:[#allocation3 + $0x1f0] sm:$0xff] }
 0x365   : > { %v2454_v30 = vpop.eup %2453 }
 0x366   : > { %v657_v31 = vmul.f32 0.6931472, %v2454_v30  ;;  %v1199_v30 = vld [vmem:[#allocation3 + $0x1f8] sm:$0xff] }
 0x368   : > { %v658_v32 = vmul.f32 %v657_v31, %v643_v14  ;;  %v2339_v14 = vpack.c.bf16 %v1193_v10, %v1192_v9  ;;  %v2324_v31 = vpack.c.bf16 %v1100_v26, %v1099_v25 }
 0x36a   : > { %v659_v33 = vsel %vm644_vm6, %v658_v32, 0.0  ;;  %v2348_v32 = vpack.c.bf16 %v1199_v30, %v1198_v29 }
 0x36b   : > { %660 = vadd.xlane.f32.xlu0 %v659_v33 }
 0x377   : > { %v2020_v38 = vpop.f32.mrb[2].mxu1 }
 0x378   : > { %v3044_v41 = vadd.f32 %v2020_v38, %v781_v34  ;;  %v887_v27 = vpop.f32.mrb[3].mxu1 }
 0x379   : > { %v888_v43 = vadd.f32 %v887_v27, %v780_v37 }
 0x37a   : > { %v1109_v47 = vrot.slane %v3044_v41, 6  ;;  %v1205_v33 = vrot.slane %v3044_v41, 1  ;;  %v1761_v41 = vld [vmem:[%s3267_s5] ss:$0 sm:$0xff] }
 0x37b   : > { %v1011_v50 = vrot.slane %v888_v43, 3  ;;  %v1108_v51 = vrot.slane %v888_v43, 6  ;;  %2054 = vmatmul.mubr.f32.vlgmr.msra.gmra.mrb[4].mxu1 %v888_v43  ;;  %v1762_v43 = vld [vmem:[%s3267_s5 + $0x1] ss:$0 sm:$0xff] }
 0x37c   : > { %2304 = vmatpush3.bf16.msra.mxu1 %v2303_v42  ;;  %2123 = vmatprep.mubr.msk.f32.mxu1 %vm2647_vm0, %v2648_v46 }
 0x37d   : > { %2089 = vmatmul.mubr.f32.vlgmr.msra.gmra.mrb[4].mxu0 %v1011_v50  ;;  %2305 = vmatprep.subr.bf16.mxu1 %v2646_v0  ;;  %v3050_v22 = vsel %vm1107_vm7, %v1108_v51, %v1109_v47  ;;  %v1763_v51 = vld [vmem:[%s3267_s5 + $0x2] ss:$0 sm:$0xff] }
 0x37e   : > { %2328 = vmatpush3.bf16.msra.mxu0 %v2327_v48  ;;  %2158 = vmatprep.mubr.msk.f32.mxu0 %vm2647_vm0, %v2648_v46 }
 0x37f   : > { %2329 = vmatprep.subr.bf16.mxu0 %v2646_v0 }
 0x380   : > { %2307 = vmatpush3.bf16.msra.mxu1 %v2306_v54 }
 0x381   : > { %2308 = vmatprep.subr.bf16.mxu1 %v2646_v0 }
 0x382   : > { %2331 = vmatpush3.bf16.msra.mxu0 %v2330_v57 }
 0x383   : > { %2332 = vmatprep.subr.bf16.mxu0 %v2646_v0 }
 0x384   : > { %2310 = vmatpush3.bf16.msra.mxu1 %v2309_v60 }
 0x385   : > { %2311 = vmatprep.subr.bf16.mxu1 %v2646_v0 }
 0x386   : > { %2334 = vmatpush3.bf16.msra.mxu0 %v2333_v2 }
 0x387   : > { %2335 = vmatprep.subr.bf16.mxu0 %v2646_v0 }
 0x388   : > { %2313 = vmatpush3.bf16.msra.mxu1 %v2312_v6 }
 0x389   : > { %2314 = vmatprep.subr.bf16.mxu1 %v2646_v0 }
 0x38a   : > { %2337 = vmatpush3.bf16.msra.mxu0 %v2336_v49 }
 0x38b   : > { %2338 = vmatprep.subr.bf16.mxu0 %v2646_v0 }
 0x38c   : > { %2316 = vmatpush3.bf16.msra.mxu1 %v2315_v11 }
 0x38d   : > { %2317 = vmatprep.subr.bf16.mxu1 %v2646_v0 }
 0x38e   : > { %2340 = vmatpush3.bf16.msra.mxu0 %v2339_v14 }
 0x38f   : > { %2341 = vmatprep.subr.bf16.mxu0 %v2646_v0 }
 0x390   : > { %2319 = vmatpush3.bf16.msra.mxu1 %v2318_v17 }
 0x391   : > { %2320 = vmatprep.subr.bf16.mxu1 %v2646_v0 }
 0x392   : > { %2343 = vmatpush3.bf16.msra.mxu0 %v2342_v20 }
 0x393   : > { %2344 = vmatprep.subr.bf16.mxu0 %v2646_v0 }
 0x394   : > { %2322 = vmatpush3.bf16.msra.mxu1 %v2321_v24 }
 0x395   : > { %2323 = vmatprep.subr.bf16.mxu1 %v2646_v0 }
 0x396   : > { %2346 = vmatpush3.bf16.msra.mxu0 %v2345_v28 }
 0x397   : > { %2347 = vmatprep.subr.bf16.mxu0 %v2646_v0 }
 0x398   : > { %2325 = vmatpush3.bf16.msra.mxu1 %v2324_v31 }
 0x399   : > { %2350 = vmatprep.subr.bf16.mxu1 %v2646_v0 }
 0x39a   : > { %2349 = vmatpush3.bf16.msra.mxu0 %v2348_v32 }
 0x39b   : > { %2124 = vmatmul.mubr.f32.vlgmr.msra.gmra.mrb[6].mxu1 %v3050_v22 }
 0x39c   : > { %2165 = vmatprep.mubr.msk.f32.mxu1 %vm2647_vm0, %v2648_v46 }
 0x39d   : > { %2159 = vmatmul.mubr.f32.vlgmr.msra.gmra.mrb[6].mxu0 %v1205_v33 }
 0x3f8   : > { %v661_v34 = vpop.xlane.xlu0 %660 }
 0x3f9   : > { %v662_v35 = vrot.slane %v661_v34, 4 }
 0x3fb   : > { %v663_v36 = vadd.f32 %v662_v35, %v661_v34 }
 0x3fd   : > { %v664_v37 = vrot.slane %v663_v36, 2 }
 0x3ff   : > { %v665_v38 = vadd.f32 %v664_v37, %v663_v36 }
 0x401   : > { %v666_v39 = vrot.slane %v665_v38, 1 }
 0x403   : > { %v667_v40 = vadd.f32 %v666_v39, %v665_v38 }
 0x405   : > { %v668_v27 = vsub.f32 0.0, %v667_v40 }
 0x407   : > { %669 = vst [vmem:[%s419_s24] sm:$0x1] %v668_v27 }
 0x44e   : > { %v983_v42 = vpop.f32.mrb[4].mxu1 }
 0x44f   : > { %v984_v44 = vadd.f32 %v1761_v41, %v983_v42  ;;  %v2055_v45 = vpop.f32.mrb[5].mxu1 }
 0x450   : > { %v1079_v47 = vpop.f32.mrb[4].mxu0 }
 0x451   : > { %987 = vst [vmem:[#allocation2] sm:$0x7] %v984_v44  ;;  %v1080_v48 = vadd.f32 %v1762_v43, %v1079_v47  ;;  %v2090_v50 = vpop.f32.mrb[5].mxu0 }
 0x453   : > { %1083 = vst [vmem:[#allocation2 + $0x3] sm:$0x7] %v1080_v48 }
 0x46e   : > { %v1178_v52 = vpop.f32.mrb[6].mxu1 }
 0x46f   : > { %v1179_v54 = vadd.f32 %v1763_v51, %v1178_v52  ;;  %v2125_v55 = vpop.f32.mrb[7].mxu1 }
 0x470   : > { %v1273_v56 = vpop.f32.mrb[6].mxu0 }
 0x471   : > { %1182 = vst [vmem:[#allocation2 + $0x6] sm:$0x7] %v1179_v54  ;;  %v1274_v22 = vadd.f32 %v1764_v53, %v1273_v56  ;;  %v2160_v57 = vpop.f32.mrb[7].mxu0 }
 0x473   : > { %1277 = vst [vmem:[#allocation2 + $0x9] sm:$0x7] %v1274_v22 }
 0x478   : > { %v1278_v58 = vld [vmem:[#allocation2] sm:$0xff] }
 0x47a   : > { %v1279_v59 = vld [vmem:[#allocation2 + $0x8] sm:$0xf] }
 0x47b   : > { %v2351_v60 = vpack.c.bf16 %v1279_v59, %v1278_v58 }
 0x47d   : > { %2353 = vmatpush3.bf16.msk.msra.mxu1 %vm2352_vm10, %v2351_v60 }
 0x47e   : > { %2354 = vmatprep.subr.bf16.mxu1 %v2646_v0 }
 0x480   : > { %2166 = vmatmul.mubr.msk.f32.vlgmr.msra.gmra.mrb[8].mxu1 %vm760_vm4, %v3030_v63 }
 0x481   : > { %2357 = vmatpush3.bf16.msk.msra.mxu1 %vm2352_vm10, %v2351_v60  ;;  %2172 = vmatprep.mubr.msk.f32.mxu1 %vm2647_vm0, %v2648_v46 }
 0x482   : > { %2358 = vmatprep.subr.bf16.mxu1 %v2646_v0 }
 0x484   : > { %2173 = vmatmul.mubr.msk.f32.vlgmr.msra.gmra.mrb[10].mxu1 %vm760_vm4, %v3032_v3 }
 0x485   : > { %2361 = vmatpush3.bf16.msk.msra.mxu1 %vm2352_vm10, %v2351_v60  ;;  %2179 = vmatprep.mubr.msk.f32.mxu1 %vm2647_vm0, %v2648_v46 }
 0x488   : > { %2180 = vmatmul.mubr.msk.f32.vlgmr.msra.gmra.mrb[12].mxu1 %vm760_vm4, %v3034_v4 }
 0x489   : > { %2496 = shalt.err (!%p2493_p7)
}
 0x48a   : > { %s2497_s24 = scalar_lea.hbm %s3108_s12, 16  ;;  %s2501_s26 = scalar_lea.hbm %s3273_s11, 32 }
 0x48b   : > { %p2498_p8 = scmp.ne.s32.totalorder %s3108_s12, %s2497_s24  ;;  %p2502_p1 = scmp.lt.u32.totalorder %s3108_s12, %s3273_s11 }
 0x48c   : > { %p2503_p0 = scmp.lt.u32.totalorder %s2501_s26, %s2497_s24  ;;  %p2505_p6 = scmp.lt.u32.totalorder %s2497_s24, %s3108_s12 }
 0x48d   : > { %p2499_p11 = pnand %p2498_p8, %p3295_p9 }
 0x48e   : > { %p2504_p5 = por %p2503_p0, %p2502_p1 }
 0x48f   : > { %p2500_p13 = pneg %p2499_p11 }
 0x490   : > { %p2506_p10 = por %p2505_p6, %p2504_p5 }
 0x492   : > { %p2507_p12 = pnand %p2506_p10, %p2500_p13 }
 0x494   : > { %2510 = shalt.err (!%p2507_p12)
}
 0x495   : > { %2369 = dma.vmem_to_hbm [thread:$0]  (%p3295_p9), %s1590_s25, 16, %s3108_s12, %s1538_s13  }
 0x496   : > { %s3129_s0 = sshll.u32 %s3073_s15, 3  ;;  %s3133_s24 = sshll.u32 %s2735_s21, 7 }
 0x497   : > { %s399_s29 = scalar_lea.vmem [#allocation6], %s3129_s0  ;;  %s3278_s22 = scalar_lea.vmem [#allocation7], %s3129_s0 }
 0x498   : > { %s1550_s14 = sshll.u32 %s399_s29, 4  ;;  %s1563_s26 = sshll.u32 %s3278_s22, 4  ;;  %s3135_s14 = int_to_ptr.vmem [resolvable:$true] %s1550_s14  ;;  %s3147_s26 = int_to_ptr.vmem [resolvable:$true] %s1563_s26 }
 0x499   : > { %s3144_s12 = scalar_lea.hbm %s3270_s8, %s3133_s24  ;;  %s1527_s13 = sand.u32 1, %s2735_s21  }
 0x49a   : > { %s1523_s30 = scalar_lea.sflag [#allocation5], %s3073_s15  ;;  %s2511_s1 = scalar_lea.vmem %s3135_s14, 128 }
 0x49b   : > { %p2512_p2 = scmp.ne.s32.totalorder %s3135_s14, %s2511_s1  ;;  %s2651_s2 = smov [#allocation6]  }
 0x49c   : > { %s2515_s22 = sshll.u32 %s2651_s2, 4  ;;  %s2516_s22 = int_to_ptr.vmem [resolvable:$false] %s2515_s22 }
 0x49d   : > { %p2513_p3 = pnand %p2512_p2, %p3295_p9  ;;  %s2517_s3 = scalar_lea.vmem %s2516_s22, 256 }
 0x49e   : > { %p2518_p7 = scmp.lt.s32.totalorder %s3135_s14, %s2516_s22  ;;  %p2519_p8 = scmp.lt.s32.totalorder %s2517_s3, %s2511_s1 }
 0x49f   : > { %p2514_p4 = pneg %p2513_p3 }
 0x4a0   : > { %p2520_p11 = por %p2519_p8, %p2518_p7 }
 0x4a2   : > { %p2521_p13 = pnand %p2520_p11, %p2514_p4 }
 0x553   : > { %v1359_v0 = vpop.f32.mrb[8].mxu1 }
 0x554   : > { %1363 = vst [vmem:[%s399_s29] sm:$0xff] %v1359_v0  ;;  %v2167_v46 = vpop.f32.mrb[9].mxu1 }
 0x555   : > { %2524 = shalt.err (!%p2521_p13)
}
 0x556   : > { %s2525_s15 = scalar_lea.hbm %s3144_s12, 128  ;;  %s2529_s2 = scalar_lea.hbm %s3270_s8, 256 }
 0x557   : > { %p2526_p1 = scmp.ne.s32.totalorder %s3144_s12, %s2525_s15  ;;  %p2530_p6 = scmp.lt.u32.totalorder %s3144_s12, %s3270_s8 }
 0x558   : > { %p2531_p10 = scmp.lt.u32.totalorder %s2529_s2, %s2525_s15  ;;  %p2533_p2 = scmp.lt.u32.totalorder %s2525_s15, %s3144_s12 }
 0x559   : > { %p2527_p0 = pnand %p2526_p1, %p3295_p9 }
 0x55a   : > { %p2532_p12 = por %p2531_p10, %p2530_p6 }
 0x55b   : > { %p2528_p5 = pneg %p2527_p0 }
 0x55c   : > { %p2534_p3 = por %p2533_p2, %p2532_p12 }
 0x55e   : > { %p2535_p4 = pnand %p2534_p3, %p2528_p5 }
 0x560   : > { %2538 = shalt.err (!%p2535_p4)
}
 0x561   : > { %2366 = dma.vmem_to_hbm [thread:$0]  (%p3295_p9), %s3135_s14, 128, %s3144_s12, %s1523_s30   ;;  %v1438_v63 = vpop.f32.mrb[10].mxu1 }
 0x562   : > { %s3175_s15 = scalar_lea.hbm %s3271_s9, %s3133_s24  ;;  %s413_s29 = scalar_lea.vmem [#allocation9], %s3129_s0  ;;  %v2174_v3 = vpop.f32.mrb[11].mxu1 }
 0x563   : > { %s3180_s16 = sshll.u32 %s413_s29, 4  ;;  %s3296_s2 = scalar_lea.vmem [#allocation7], %s3129_s0  ;;  %s3211_s16 = int_to_ptr.vmem [resolvable:$true] %s3180_s16 }
 0x564   : > { %1442 = vst [vmem:[%s3296_s2] sm:$0xff] %v1438_v63  ;;  %s3186_s25 = scalar_lea.sflag [#allocation8], %s1527_s13  ;;  %s2539_s22 = scalar_lea.vmem %s3147_s26, 128 }
 0x565   : > { %p2540_p7 = scmp.ne.s32.totalorder %s3147_s26, %s2539_s22  ;;  %s2652_s14 = smov [#allocation7]  }
 0x566   : > { %s2543_s12 = sshll.u32 %s2652_s14, 4  ;;  %s2544_s12 = int_to_ptr.vmem [resolvable:$false] %s2543_s12 }
 0x567   : > { %p2541_p8 = pnand %p2540_p7, %p3295_p9  ;;  %s2545_s30 = scalar_lea.vmem %s2544_s12, 256 }
 0x568   : > { %p2546_p13 = scmp.lt.s32.totalorder %s3147_s26, %s2544_s12  ;;  %p2547_p1 = scmp.lt.s32.totalorder %s2545_s30, %s2539_s22 }
 0x569   : > { %p2542_p11 = pneg %p2541_p8 }
 0x56a   : > { %p2548_p0 = por %p2547_p1, %p2546_p13 }
 0x56c   : > { %p2549_p5 = pnand %p2548_p0, %p2542_p11 }
 0x56e   : > { %2552 = shalt.err (!%p2549_p5)
}
 0x56f   : > { %s2553_s21 = scalar_lea.hbm %s3175_s15, 128  ;;  %s2557_s3 = scalar_lea.hbm %s3271_s9, 256 }
 0x570   : > { %p2554_p6 = scmp.ne.s32.totalorder %s3175_s15, %s2553_s21  ;;  %p2558_p2 = scmp.lt.u32.totalorder %s3175_s15, %s3271_s9 }
 0x571   : > { %p2559_p3 = scmp.lt.u32.totalorder %s2557_s3, %s2553_s21  ;;  %p2561_p7 = scmp.lt.u32.totalorder %s2553_s21, %s3175_s15 }
 0x572   : > { %p2555_p10 = pnand %p2554_p6, %p3295_p9 }
 0x573   : > { %p2560_p4 = por %p2559_p3, %p2558_p2 }
 0x574   : > { %p2556_p12 = pneg %p2555_p10 }
 0x575   : > { %p2562_p8 = por %p2561_p7, %p2560_p4 }
 0x577   : > { %p2563_p11 = pnand %p2562_p8, %p2556_p12 }
 0x579   : > { %2566 = shalt.err (!%p2563_p11)
}
 0x57a   : > { %2367 = dma.vmem_to_hbm [thread:$0]  (%p3295_p9), %s3147_s26, 128, %s3175_s15, %s3186_s25   ;;  %v1517_v4 = vpop.f32.mrb[12].mxu1 }
 0x57b   : > { %s3217_s30 = scalar_lea.hbm %s3272_s10, %s3133_s24  ;;  %1521 = vst [vmem:[%s413_s29] sm:$0xff] %v1517_v4  ;;  %v2181_v61 = vpop.f32.mrb[13].mxu1  ;;  %s2567_s21 = scalar_lea.vmem %s3211_s16, 128 }
 0x57c   : > { %p2568_p13 = scmp.ne.s32.totalorder %s3211_s16, %s2567_s21  ;;  %s2653_s26 = smov [#allocation9]  }
 0x57d   : > { %s2571_s15 = sshll.u32 %s2653_s26, 4  ;;  %s2572_s15 = int_to_ptr.vmem [resolvable:$false] %s2571_s15 }
 0x57e   : > { %p2569_p1 = pnand %p2568_p13, %p3295_p9  ;;  %s2573_s13 = scalar_lea.vmem %s2572_s15, 256 }
 0x57f   : > { %p2574_p5 = scmp.lt.s32.totalorder %s3211_s16, %s2572_s15  ;;  %p2575_p6 = scmp.lt.s32.totalorder %s2573_s13, %s2567_s21 }
 0x580   : > { %p2570_p0 = pneg %p2569_p1 }
 0x581   : > { %p2576_p10 = por %p2575_p6, %p2574_p5 }
 0x583   : > { %p2577_p12 = pnand %p2576_p10, %p2570_p0 }
 0x585   : > { %2580 = shalt.err (!%p2577_p12)
}
 0x586   : > { %s2581_s0 = scalar_lea.hbm %s3217_s30, 128  ;;  %s2585_s1 = scalar_lea.hbm %s3272_s10, 256 }
 0x587   : > { %p2582_p2 = scmp.ne.s32.totalorder %s3217_s30, %s2581_s0  ;;  %p2586_p7 = scmp.lt.u32.totalorder %s3217_s30, %s3272_s10 }
 0x588   : > { %p2587_p8 = scmp.lt.u32.totalorder %s2585_s1, %s2581_s0  ;;  %p2589_p13 = scmp.lt.u32.totalorder %s2581_s0, %s3217_s30 }
 0x589   : > { %p2583_p3 = pnand %p2582_p2, %p3295_p9 }
 0x58a   : > { %p2588_p11 = por %p2587_p8, %p2586_p7 }
 0x58b   : > { %p2584_p4 = pneg %p2583_p3 }
 0x58c   : > { %p2590_p1 = por %p2589_p13, %p2588_p11 }
 0x58e   : > { %p2591_p0 = pnand %p2590_p1, %p2584_p4 }
 0x590   : > { %2594 = shalt.err (!%p2591_p0)
}
 0x591   : > { %2368 = dma.vmem_to_hbm [thread:$0]  (%p3295_p9), %s3211_s16, 128, %s3217_s30, %s3186_s25  }
 0x592 PF: > { %p2393_p5 = scmp.ge.s32.totalorder %s2641_s20, 2  ;;  %s1601_s14 = sand.u32 1, %s2629_s17  }
 0x593   : > { %p3297_p6 = scmp.ne.s32.totalorder %s3285_s28, 0  ;;  %s1602_s22 = scalar_lea.sflag [#allocation5], %s1601_s14 }
 0x595   : > { %p2379_p10 = pnand %p2393_p5, %p3297_p6 }
 0x597   : > { %2616 = dma.done.wait (!%p2379_p10), %s1602_s22, 128  }
 0x598   : > { %2618 = vsyncadd (!%p2379_p10), %s1602_s22, 4294967168  ;;  %s3298_s12 = sadd.s32 4294967294, %s2641_s20  }
 0x599   : > { %s1610_s21 = sand.u32 1, %s3298_s12  }
 0x59a   : > { %s1611_s26 = scalar_lea.sflag [#allocation8], %s1610_s21 }
 0x59b   : > { %2620 = dma.done.wait (!%p2379_p10), %s1611_s26, 256  }
 0x59c   : > { %2622 = vsyncadd (!%p2379_p10), %s1611_s26, 4294967040  ;;  %s1629_s27 = scalar_lea.sflag [#allocation11], %s1601_s14 }
 0x59d   : > { %2624 = dma.done.wait (!%p2379_p10), %s1629_s27, 16  }
 0x59e   : > { %2626 = vsyncadd (!%p2379_p10), %s1629_s27, 4294967280  ;;  %s3299_s16 = sld [smem:[#allocation16_spill]]  ;;  %p29_p9 = scmp.ge.s32.totalorder %s2739_s23, 4  }
 0x59f   : > { %s3300_s17 = smov %s2633_s18  ;;  %s3301_s18 = smov %s2637_s19 }
 0x5a0   : > { %s3303_s20 = smov %s2739_s23  ;;  %31 = sbr.rel (!%p29_p9) target bundleno = 13 (0xd), region = 144 }
 0x5a4   : > { %s3302_s19 = smov %s3299_s16 }
 0x5a7   :  { %1633 = vsyncpa [#allocation4], 1 }
 0x5a8   :  { %1635 = vsyncpa [#allocation4 + $0x1], 1 }
 0x5a9   :  { %1636 = vsyncpa [#allocation5], 1 }
 0x5aa   :  { %1638 = vsyncpa [#allocation5 + $0x1], 1 }
 0x5ab   :  { %1639 = vsyncpa [#allocation8], 1 }
 0x5ac   :  { %1641 = vsyncpa [#allocation8 + $0x1], 1 }
 0x5ad   :  { %1642 = vsyncpa [#allocation11], 1 }
 0x5ae   :  { %1644 = vsyncpa [#allocation11 + $0x1], 1 }

</bundles_post_ra>
